<compile_context>
chip_gen: v7x
topology: tpu7x:2x2x1
jax: 0.10.0
libtpu: 0.0.40
codegen_flags: <defaults>
</compile_context>

<pallas_src>
import jax
import jax.numpy as jnp
import numpy as np
from jax.experimental import pallas as pl
from jax.experimental.pallas import tpu as pltpu


def _periodic_kernel(scale2_ref, pi_over_p2_ref, neg2_inv_l2_ref,
                     loc1_ref, loc2t_ref, out_ref):
    """One grid step computes a (K, tm, tn) output tile."""
    x = loc1_ref[...]      # (tm, D)
    yT = loc2t_ref[...]    # (D, tn)
    tm, D = x.shape
    tn = yT.shape[1]

    # --- pairwise squared euclidean distance (k-invariant: computed once per tile) ---
    if D >= 8:
        # MXU formulation: ||x||^2 + ||y||^2 - 2 x @ yT (vector-extended slot is idle).
        x2 = jnp.sum(x * x, axis=-1, keepdims=True)               # (tm, 1)
        y2 = jnp.sum(yT * yT, axis=0, keepdims=True)              # (1, tn)
        xy = jnp.dot(x, yT, preferred_element_type=jnp.float32)   # (tm, tn)
        sqd = jnp.maximum(x2 + y2 - 2.0 * xy, 0.0)                # clamp: cancellation
    else:
        # Tiny D: static unrolled VPU accumulation, all intermediates lane-dense 2-D.
        sqd = jnp.zeros((tm, tn), jnp.float32)
        for d in range(D):
            diff = x[:, d:d + 1] - yT[d:d + 1, :]                 # (tm,1)-(1,tn)->(tm,tn)
            sqd = sqd + diff * diff
    dist = jnp.sqrt(sqd)                                          # (tm, tn)

    # --- per-kernel elementwise map: 2 muls + sin + exp (scalars precomputed) ---
    num_k = out_ref.shape[0]
    for k in range(num_k):                                        # static unroll over K
        s = jnp.sin(dist * pi_over_p2_ref[k])
        out_ref[k, :, :] = scale2_ref[k] * jnp.exp((s * s) * neg2_inv_l2_ref[k])


def _round_up(x, m):
    return (x + m - 1) // m * m


def periodic_kernel_forward(loc1, loc2, scale, lengthscale, period, *, tn=128):
    """Pallas wrapper: returns K of shape (num_kernels, M, N), f32."""
    M, D = loc1.shape
    N, D2 = loc2.shape
    assert D == D2
    K = scale.shape[0]

    # Precompute per-kernel scalar constants (removes the per-element divide).
    scale2 = (scale * scale).astype(jnp.float32)
    pi_over_p2 = (jnp.float32(np.pi) / (period * period)).astype(jnp.float32)
    neg2_inv_l2 = (-2.0 / (lengthscale * lengthscale)).astype(jnp.float32)

    # Tile sizes: lane-dense tn (multiple of 128); tm sublane-aligned, capped at 128.
    tm = min(128, _round_up(M, 8))
    M_pad = _round_up(M, tm)
    N_pad = _round_up(N, tn)

    loc1_p = jnp.pad(loc1.astype(jnp.float32), ((0, M_pad - M), (0, 0)))
    # Transpose loc2 to (D, N) in the wrapper so the in-kernel distance keeps the
    # lane-dense last dim = N; pad N up to a multiple of 128.
    loc2_t = jnp.pad(jnp.transpose(loc2.astype(jnp.float32)),
                     ((0, 0), (0, N_pad - N)))

    grid = (M_pad // tm, N_pad // tn)

    out = pl.pallas_call(
        _periodic_kernel,
        out_shape=jax.ShapeDtypeStruct((K, M_pad, N_pad), jnp.float32),
        grid=grid,
        in_specs=[
            pl.BlockSpec(memory_space=pltpu.MemorySpace.SMEM),   # scale^2        (K,)
            pl.BlockSpec(memory_space=pltpu.MemorySpace.SMEM),   # pi/period^2    (K,)
            pl.BlockSpec(memory_space=pltpu.MemorySpace.SMEM),   # -2/length^2    (K,)
            pl.BlockSpec((tm, D), lambda i, j: (i, 0)),          # loc1   (M_pad, D)
            pl.BlockSpec((D, tn), lambda i, j: (0, j)),          # loc2^T (D, N_pad)
        ],
        out_specs=pl.BlockSpec((K, tm, tn), lambda i, j: (0, i, j)),
        compiler_params=pltpu.CompilerParams(
            dimension_semantics=("parallel", "parallel"),
            vmem_limit_bytes=32 * 1024 * 1024),
    )(scale2, pi_over_p2, neg2_inv_l2, loc1_p, loc2_t)

    return out[:, :M, :N]


def periodic_kernel_reference(loc1, loc2, scale, lengthscale, period):
    """Pure-JAX reference mirroring the PyTorch module exactly."""
    diff = loc1[:, None, :] - loc2[None, :, :]
    sqd = jnp.sum(diff * diff, axis=-1)
    dist = jnp.sqrt(sqd)[None]                      # unsqueeze(0)
    p2 = (period ** 2)[:, None, None]
    s2 = (scale ** 2)[:, None, None]
    l2 = (lengthscale ** 2)[:, None, None]
    return s2 * jnp.exp(-2.0 * jnp.sin(dist * jnp.pi / p2) ** 2 / l2)


if __name__ == "__main__":
    key = jax.random.PRNGKey(0)
    k1, k2 = jax.random.split(key)

    M, N, D, NUM_K = 16, 16, 2, 4   # small shapes: M/N inducing & query points

    locations1 = jax.random.normal(k1, (M, D), dtype=jnp.float32)
    locations2 = jax.random.normal(k2, (N, D), dtype=jnp.float32)

    # Deterministic "parameters" (shapes match module: one scalar per latent kernel).
    scale = jnp.array([1.0, 0.8, 1.2, 0.5], dtype=jnp.float32)
    lengthscale = jnp.array([0.9, 1.1, 0.7, 1.3], dtype=jnp.float32)
    period = jnp.array([1.0, 1.5, 0.8, 2.0], dtype=jnp.float32)

    out = periodic_kernel_forward(locations1, locations2, scale, lengthscale, period)
    out = jax.block_until_ready(out)

    ref = periodic_kernel_reference(locations1, locations2, scale, lengthscale, period)
    assert out.shape == (NUM_K, M, N)
    np.testing.assert_allclose(np.asarray(out), np.asarray(ref), rtol=1e-5, atol=1e-5)

    print("KERNEL_OK")
</pallas_src>

<mosaic_0001>
module attributes {stable_mosaic.version = 11 : i64} {
  func.func @_periodic_kernel(%arg0: i32, %arg1: i32, %arg2: memref<4xf32, #tpu.memory_space<smem>>, %arg3: memref<4xf32, #tpu.memory_space<smem>>, %arg4: memref<4xf32, #tpu.memory_space<smem>>, %arg5: memref<16x2xf32, #tpu.memory_space<vmem>>, %arg6: memref<2x128xf32, #tpu.memory_space<vmem>>, %arg7: memref<4x16x128xf32, #tpu.memory_space<vmem>>) attributes {dimension_semantics = [#tpu.dimension_semantics<parallel>, #tpu.dimension_semantics<parallel>], iteration_bounds = array<i64: 1, 1>, scalar_prefetch = 0 : i64, scratch_operands = 0 : i64, tpu.core_type = #tpu.core_type<tc>, window_params = [{transform_indices = @transform_0, window_bounds = array<i64: 4>}, {transform_indices = @transform_1, window_bounds = array<i64: 4>}, {transform_indices = @transform_2, window_bounds = array<i64: 4>}, {transform_indices = @transform_3, window_bounds = array<i64: 16, 2>}, {transform_indices = @transform_4, window_bounds = array<i64: 2, 128>}, {transform_indices = @transform_5, window_bounds = array<i64: 4, 16, 128>}]} {
    %c0 = arith.constant 0 : index
    %c0_0 = arith.constant 0 : index
    %0 = vector.load %arg5[%c0, %c0_0] : memref<16x2xf32, #tpu.memory_space<vmem>>, vector<16x2xf32>
    %c0_1 = arith.constant 0 : index
    %c0_2 = arith.constant 0 : index
    %1 = vector.load %arg6[%c0_1, %c0_2] : memref<2x128xf32, #tpu.memory_space<vmem>>, vector<2x128xf32>
    %cst = arith.constant 0.000000e+00 : f32
    %2 = vector.broadcast %cst : f32 to vector<16x128xf32>
    %3 = vector.extract_strided_slice %0 {offsets = [0, 0], sizes = [16, 1], strides = [1, 1]} : vector<16x2xf32> to vector<16x1xf32>
    %4 = vector.extract_strided_slice %1 {offsets = [0, 0], sizes = [1, 128], strides = [1, 1]} : vector<2x128xf32> to vector<1x128xf32>
    %5 = vector.broadcast %3 : vector<16x1xf32> to vector<16x128xf32>
    %6 = vector.broadcast %4 : vector<1x128xf32> to vector<16x128xf32>
    %7 = arith.subf %5, %6 : vector<16x128xf32>
    %8 = arith.mulf %7, %7 : vector<16x128xf32>
    %9 = arith.addf %2, %8 : vector<16x128xf32>
    %10 = vector.extract_strided_slice %0 {offsets = [0, 1], sizes = [16, 1], strides = [1, 1]} : vector<16x2xf32> to vector<16x1xf32>
    %11 = vector.extract_strided_slice %1 {offsets = [1, 0], sizes = [1, 128], strides = [1, 1]} : vector<2x128xf32> to vector<1x128xf32>
    %12 = vector.broadcast %10 : vector<16x1xf32> to vector<16x128xf32>
    %13 = vector.broadcast %11 : vector<1x128xf32> to vector<16x128xf32>
    %14 = arith.subf %12, %13 : vector<16x128xf32>
    %15 = arith.mulf %14, %14 : vector<16x128xf32>
    %16 = arith.addf %9, %15 : vector<16x128xf32>
    %17 = math.sqrt %16 : vector<16x128xf32>
    %c0_3 = arith.constant 0 : index
    %18 = memref.load %arg3[%c0_3] : memref<4xf32, #tpu.memory_space<smem>>
    %19 = vector.broadcast %18 : f32 to vector<16x128xf32>
    %20 = arith.mulf %17, %19 : vector<16x128xf32>
    %21 = math.sin %20 : vector<16x128xf32>
    %c0_4 = arith.constant 0 : index
    %22 = memref.load %arg2[%c0_4] : memref<4xf32, #tpu.memory_space<smem>>
    %23 = arith.mulf %21, %21 : vector<16x128xf32>
    %c0_5 = arith.constant 0 : index
    %24 = memref.load %arg4[%c0_5] : memref<4xf32, #tpu.memory_space<smem>>
    %25 = vector.broadcast %24 : f32 to vector<16x128xf32>
    %26 = arith.mulf %23, %25 : vector<16x128xf32>
    %27 = math.exp %26 : vector<16x128xf32>
    %28 = vector.broadcast %22 : f32 to vector<16x128xf32>
    %29 = arith.mulf %28, %27 : vector<16x128xf32>
    %c0_6 = arith.constant 0 : index
    %c0_7 = arith.constant 0 : index
    %c0_8 = arith.constant 0 : index
    %30 = vector.load %arg7[%c0_6, %c0_7, %c0_8] : memref<4x16x128xf32, #tpu.memory_space<vmem>>, vector<1x16x128xf32>
    %31 = vector.shape_cast %30 : vector<1x16x128xf32> to vector<16x128xf32>
    %32 = vector.shape_cast %29 : vector<16x128xf32> to vector<1x16x128xf32>
    tpu.vector_store %arg7[%c0_6, %c0_7, %c0_8], %32 {strides = array<i32>} : memref<4x16x128xf32, #tpu.memory_space<vmem>>, vector<1x16x128xf32>,
    %c1 = arith.constant 1 : index
    %33 = memref.load %arg3[%c1] : memref<4xf32, #tpu.memory_space<smem>>
    %34 = vector.broadcast %33 : f32 to vector<16x128xf32>
    %35 = arith.mulf %17, %34 : vector<16x128xf32>
    %36 = math.sin %35 : vector<16x128xf32>
    %c1_9 = arith.constant 1 : index
    %37 = memref.load %arg2[%c1_9] : memref<4xf32, #tpu.memory_space<smem>>
    %38 = arith.mulf %36, %36 : vector<16x128xf32>
    %c1_10 = arith.constant 1 : index
    %39 = memref.load %arg4[%c1_10] : memref<4xf32, #tpu.memory_space<smem>>
    %40 = vector.broadcast %39 : f32 to vector<16x128xf32>
    %41 = arith.mulf %38, %40 : vector<16x128xf32>
    %42 = math.exp %41 : vector<16x128xf32>
    %43 = vector.broadcast %37 : f32 to vector<16x128xf32>
    %44 = arith.mulf %43, %42 : vector<16x128xf32>
    %c1_11 = arith.constant 1 : index
    %c0_12 = arith.constant 0 : index
    %c0_13 = arith.constant 0 : index
    %45 = vector.load %arg7[%c1_11, %c0_12, %c0_13] : memref<4x16x128xf32, #tpu.memory_space<vmem>>, vector<1x16x128xf32>
    %46 = vector.shape_cast %45 : vector<1x16x128xf32> to vector<16x128xf32>
    %47 = vector.shape_cast %44 : vector<16x128xf32> to vector<1x16x128xf32>
    tpu.vector_store %arg7[%c1_11, %c0_12, %c0_13], %47 {strides = array<i32>} : memref<4x16x128xf32, #tpu.memory_space<vmem>>, vector<1x16x128xf32>,
    %c2 = arith.constant 2 : index
    %48 = memref.load %arg3[%c2] : memref<4xf32, #tpu.memory_space<smem>>
    %49 = vector.broadcast %48 : f32 to vector<16x128xf32>
    %50 = arith.mulf %17, %49 : vector<16x128xf32>
    %51 = math.sin %50 : vector<16x128xf32>
    %c2_14 = arith.constant 2 : index
    %52 = memref.load %arg2[%c2_14] : memref<4xf32, #tpu.memory_space<smem>>
    %53 = arith.mulf %51, %51 : vector<16x128xf32>
    %c2_15 = arith.constant 2 : index
    %54 = memref.load %arg4[%c2_15] : memref<4xf32, #tpu.memory_space<smem>>
    %55 = vector.broadcast %54 : f32 to vector<16x128xf32>
    %56 = arith.mulf %53, %55 : vector<16x128xf32>
    %57 = math.exp %56 : vector<16x128xf32>
    %58 = vector.broadcast %52 : f32 to vector<16x128xf32>
    %59 = arith.mulf %58, %57 : vector<16x128xf32>
    %c2_16 = arith.constant 2 : index
    %c0_17 = arith.constant 0 : index
    %c0_18 = arith.constant 0 : index
    %60 = vector.load %arg7[%c2_16, %c0_17, %c0_18] : memref<4x16x128xf32, #tpu.memory_space<vmem>>, vector<1x16x128xf32>
    %61 = vector.shape_cast %60 : vector<1x16x128xf32> to vector<16x128xf32>
    %62 = vector.shape_cast %59 : vector<16x128xf32> to vector<1x16x128xf32>
    tpu.vector_store %arg7[%c2_16, %c0_17, %c0_18], %62 {strides = array<i32>} : memref<4x16x128xf32, #tpu.memory_space<vmem>>, vector<1x16x128xf32>,
    %c3 = arith.constant 3 : index
    %63 = memref.load %arg3[%c3] : memref<4xf32, #tpu.memory_space<smem>>
    %64 = vector.broadcast %63 : f32 to vector<16x128xf32>
    %65 = arith.mulf %17, %64 : vector<16x128xf32>
    %66 = math.sin %65 : vector<16x128xf32>
    %c3_19 = arith.constant 3 : index
    %67 = memref.load %arg2[%c3_19] : memref<4xf32, #tpu.memory_space<smem>>
    %68 = arith.mulf %66, %66 : vector<16x128xf32>
    %c3_20 = arith.constant 3 : index
    %69 = memref.load %arg4[%c3_20] : memref<4xf32, #tpu.memory_space<smem>>
    %70 = vector.broadcast %69 : f32 to vector<16x128xf32>
    %71 = arith.mulf %68, %70 : vector<16x128xf32>
    %72 = math.exp %71 : vector<16x128xf32>
    %73 = vector.broadcast %67 : f32 to vector<16x128xf32>
    %74 = arith.mulf %73, %72 : vector<16x128xf32>
    %c3_21 = arith.constant 3 : index
    %c0_22 = arith.constant 0 : index
    %c0_23 = arith.constant 0 : index
    %75 = vector.load %arg7[%c3_21, %c0_22, %c0_23] : memref<4x16x128xf32, #tpu.memory_space<vmem>>, vector<1x16x128xf32>
    %76 = vector.shape_cast %75 : vector<1x16x128xf32> to vector<16x128xf32>
    %77 = vector.shape_cast %74 : vector<16x128xf32> to vector<1x16x128xf32>
    tpu.vector_store %arg7[%c3_21, %c0_22, %c0_23], %77 {strides = array<i32>} : memref<4x16x128xf32, #tpu.memory_space<vmem>>, vector<1x16x128xf32>,
    return
  }
  func.func @transform_0(%arg0: i32, %arg1: i32) -> i32 {
    %c0_i32 = arith.constant 0 : i32
    %c0_i32_0 = arith.constant 0 : i32
    return %c0_i32 : i32
  }
  func.func @transform_1(%arg0: i32, %arg1: i32) -> i32 {
    %c0_i32 = arith.constant 0 : i32
    %c0_i32_0 = arith.constant 0 : i32
    return %c0_i32 : i32
  }
  func.func @transform_2(%arg0: i32, %arg1: i32) -> i32 {
    %c0_i32 = arith.constant 0 : i32
    %c0_i32_0 = arith.constant 0 : i32
    return %c0_i32 : i32
  }
  func.func @transform_3(%arg0: i32, %arg1: i32) -> (i32, i32) {
    %c0_i32 = arith.constant 0 : i32
    %c0_i32_0 = arith.constant 0 : i32
    return %arg0, %c0_i32 : i32, i32
  }
  func.func @transform_4(%arg0: i32, %arg1: i32) -> (i32, i32) {
    %c0_i32 = arith.constant 0 : i32
    %c0_i32_0 = arith.constant 0 : i32
    return %c0_i32, %arg1 : i32, i32
  }
  func.func @transform_5(%arg0: i32, %arg1: i32) -> (i32, i32, i32) {
    %c0_i32 = arith.constant 0 : i32
    %c0_i32_0 = arith.constant 0 : i32
    return %c0_i32, %arg0, %arg1 : i32, i32, i32
  }
}

</mosaic_0001>

<bundles_post_ra>
// kernel: tpu_custom_call.1
= control target key start
LH: loop header
LB: loop body
LE: loop exit
PB: predicated region body
PF: predicated region fallthrough
CT: control target
= control target key end

     0   :  { %10 = vsyncpa [#allocation4], 0  ;;  %s2033_s0 = inlined_call_operand.vmem [shape: f32[4], index: 0, kind: input, shape index: {}]   ;;  %s2034_s1 = inlined_call_operand.vmem [shape: f32[4], index: 1, kind: input, shape index: {}]   ;;  %s2035_s2 = inlined_call_operand.vmem [shape: f32[4], index: 2, kind: input, shape index: {}]   ;;  %s2036_s3 = inlined_call_operand.vmem [shape: f32[16,2], index: 3, kind: input, shape index: {}]   ;;  %s2037_s4 = inlined_call_operand.vmem [shape: f32[2,128], index: 4, kind: input, shape index: {}]   ;;  %s2038_s5 = inlined_call_operand.hbm [shape: f32[4,16,128], index: 5, kind: output, shape index: {}]  }
   0x1   :  { %11 = vsyncpa [#allocation6], 0  ;;  %s29_s20 = sshll.u32 %s2034_s1, 4  ;;  %s30_s20 = int_to_ptr.vmem [resolvable:$true] %s29_s20 }
   0x2   :  { %12 = vsyncpa [#allocation3], 0  ;;  %s19_s23 = sshll.u32 %s2033_s0, 4  ;;  %s1187_s24 = scalar_lea.vmem %s30_s20, 16  ;;  %s20_s23 = int_to_ptr.vmem [resolvable:$true] %s19_s23 }
   0x3   :  { %p1188_p0 = scmp.ne.s32.totalorder %s30_s20, %s1187_s24  ;;  %p1192_p1 = scmp.lt.s32.totalorder %s30_s20, %s30_s20 }
   0x4   :  { %p1193_p2 = scmp.lt.s32.totalorder %s1187_s24, %s1187_s24 }
   0x6   :  { %p1194_p3 = por %p1193_p2, %p1192_p1 }
   0x8   :  { %p1195_p4 = pnand %p1194_p3, %p1188_p0 }
   0xa   :  { %1198 = shalt.err (!%p1195_p4)
}
   0xb   :  { %s1251_s25 = smov [#allocation5]   ;;  %s1199_s26 = scalar_lea.vmem %s20_s23, 16 }
   0xc   :  { %32 = dma.vmem_to_smem %s30_s20, 16, %s1251_s25, [#allocation6]  }
   0xd   :  { %p1200_p5 = scmp.ne.s32.totalorder %s20_s23, %s1199_s26  ;;  %p1204_p6 = scmp.lt.s32.totalorder %s20_s23, %s20_s23 }
   0xe   :  { %p1205_p7 = scmp.lt.s32.totalorder %s1199_s26, %s1199_s26 }
  0x10   :  { %p1206_p8 = por %p1205_p7, %p1204_p6 }
  0x12   :  { %p1207_p9 = pnand %p1206_p8, %p1200_p5 }
  0x14   :  { %1210 = shalt.err (!%p1207_p9)
}
  0x15   :  { %s1252_s1 = smov [#allocation2]   ;;  %s39_s28 = sshll.u32 %s2035_s2, 4  ;;  %s40_s28 = int_to_ptr.vmem [resolvable:$true] %s39_s28 }
  0x16   :  { %22 = dma.vmem_to_smem %s20_s23, 16, %s1252_s1, [#allocation4]  }
  0x17   :  { %s1211_s29 = scalar_lea.vmem %s40_s28, 16  ;;  %p1216_p11 = scmp.lt.s32.totalorder %s40_s28, %s40_s28 }
  0x18   :  { %p1212_p10 = scmp.ne.s32.totalorder %s40_s28, %s1211_s29  ;;  %p1217_p12 = scmp.lt.s32.totalorder %s1211_s29, %s1211_s29 }
  0x1a   :  { %p1218_p13 = por %p1217_p12, %p1216_p11 }
  0x1c   :  { %p1219_p0 = pnand %p1218_p13, %p1212_p10 }
  0x1e   :  { %1222 = shalt.err (!%p1219_p0)
}
  0x1f   :  { %s1253_s30 = smov [#allocation7]  }
  0x20   :  { %42 = dma.vmem_to_smem %s40_s28, 16, %s1253_s30, [#allocation6]  }
  0x21   :  { %1245 = dma.done.wait [#allocation4], 16  }
  0x22   :  { %1246 = vsyncadd [#allocation4], 4294967280 }
  0x23   :  { %1247 = dma.done.wait [#allocation6], 32  }
  0x24   :  { %1248 = vsyncadd [#allocation6], 4294967264 }
  0x25   :  { %56 = sfence }
  0x26   :  { %v57_v0 = vld [vmem:[%s2036_s3] sm:$0xff]  ;;  %v1254_v1 = vmov 1   ;;  %v1255_v2 = vmov 0   ;;  %v58_v3 = vld [vmem:[%s2036_s3 + $0x8] sm:$0xff]  ;;  %v70_v4 = vlaneseq  ;;  %s112_s3 = sld [smem:[#allocation5]]  ;;  %s1402_s11 = sld [smem:[#allocation5 + $0x2]] }
  0x27   :  { %1133 = vset.pattern.permute.xlu1 %v1254_v1  ;;  %1132 = vset.pattern.permute.xlu0 %v1255_v2  ;;  %v59_v8 = vld [vmem:[%s2037_s4] sm:$0x3]  ;;  %s1313_s4 = sld [smem:[#allocation5 + $0x1]]  ;;  %s1407_s12 = sld [smem:[#allocation2]] }
  0x28   :  { %81 = vperm.xlu1 %1133, %v57_v0   ;;  %62 = vperm.xlu0 %1132, %v57_v0   ;;  %v71_v5 = vshrl.u32 %v70_v4, 7  ;;  %s1409_s13 = sld [smem:[#allocation7]]  ;;  %s1515_s14 = sld [smem:[#allocation5 + $0x3]] }
  0x29   :  { %s1651_s15 = sld [smem:[#allocation7 + $0x1]]  ;;  %s1920_s17 = sld [smem:[#allocation7 + $0x2]] }
  0x2a   :  { %v72_v6 = vsub.s32 0, %v71_v5  ;;  %v90_v7 = vsub.s32 1, %v71_v5  ;;  %v1258_v5 = vmov 2131351028   ;;  %s1733_s16 = sld [smem:[#allocation2 + $0x1]]  ;;  %s1939_s18 = sld [smem:[#allocation2 + $0x2]] }
  0x2b   :  { %s2007_s19 = sld [smem:[#allocation7 + $0x3]]  ;;  %s1262_s21 = smov [#allocation8]  }
  0x2c   :  { %85 = vperm.xlu1 %1133, %v58_v3   ;;  %67 = vperm.xlu0 %1132, %v58_v3   ;;  %v73_v9 = vrot.slane %v59_v8, %v72_v6  ;;  %v91_v10 = vrot.slane %v59_v8, %v90_v7  ;;  %v113_v28 = vstv %s112_s3  ;;  %v1257_v3 = vmov 2475754826   ;;  %s2016_s20 = sld [smem:[#allocation2 + $0x3]]  ;;  %s1032_s22 = sshll.u32 %s1262_s21, 4  ;;  %s1033_s22 = int_to_ptr.vmem [resolvable:$true] %s1032_s22 }
  0x2d   :  { %v341_v30 = vstv %s1313_s4  ;;  %v1259_v7 = vmov 2102212464   ;;  %s1223_s23 = scalar_lea.vmem %s1033_s22, 1024  ;;  %p1228_p2 = scmp.lt.s32.totalorder %s1033_s22, %s1033_s22 }
  0x2e   :  { %p1224_p1 = scmp.ne.s32.totalorder %s1033_s22, %s1223_s23  ;;  %p1229_p3 = scmp.lt.s32.totalorder %s1223_s23, %s1223_s23 }
  0x30   :  { %1134 = vset.pattern.permute.xlu0 %v1254_v1  ;;  %v1256_v1 = vmov 683565275   ;;  %p1230_p4 = por %p1229_p3, %p1228_p2 }
  0x32   :  { %p1231_p5 = pnand %p1230_p4, %p1224_p1 }
  0xa7   :  { %v82_v11 = vpop.permute.xlu1 %81  ;;  %v63_v12 = vpop.permute.xlu0 %62 }
  0xa8   :  { %v74_v13 = vsub.f32 %v63_v12, %v73_v9  ;;  %v92_v14 = vsub.f32 %v82_v11, %v91_v10 }
  0xaa   :  { %v76_v15 = vmul.f32 %v74_v13, %v74_v13  ;;  %v94_v16 = vmul.f32 %v92_v14, %v92_v14 }
  0xab   :  { %v86_v17 = vpop.permute.xlu1 %85  ;;  %v68_v18 = vpop.permute.xlu0 %67 }
  0xac   :  { %v75_v19 = vsub.f32 %v68_v18, %v73_v9  ;;  %v93_v20 = vsub.f32 %v86_v17, %v91_v10  ;;  %v96_v21 = vadd.f32 %v94_v16, %v76_v15  ;;  %v1260_v9 = vmov 920167782  }
  0xad   :  { %v1261_v16 = vmov 1326507024  }
  0xae   :  { %v77_v22 = vmul.f32 %v75_v19, %v75_v19  ;;  %v95_v23 = vmul.f32 %v93_v20, %v93_v20  ;;  %1135 = vrsqrt.f32 %v96_v21  ;;  %vm100_vm0 = vcmp.eq.f32.partialorder %v96_v21, inf }
  0xaf   :  { %v103_v27 = vand.u32 2147483648, %v96_v21  ;;  %vm102_vm1 = vcmp.eq.f32.partialorder %v96_v21, 0.0 }
  0xb0   :  { %v97_v24 = vadd.f32 %v95_v23, %v77_v22 }
  0xb2   :  { %1137 = vrsqrt.f32 %v97_v24  ;;  %vm107_vm2 = vcmp.eq.f32.partialorder %v97_v24, inf  ;;  %v110_v35 = vand.u32 2147483648, %v97_v24  ;;  %vm109_vm3 = vcmp.eq.f32.partialorder %v97_v24, 0.0 }
  0xb8   :  { %v1136_v25 = vpop.eup %1135 }
  0xb9   :  { %v99_v26 = vmul.f32 %v1136_v25, %v96_v21 }
  0xbb   :  { %v101_v29 = vsel %vm100_vm0, %v96_v21, %v99_v26 }
  0xbc   :  { %v1138_v31 = vpop.eup %1137  ;;  %v1316_v32 = vsel %vm102_vm1, %v103_v27, %v101_v29 }
  0xbd   :  { %v106_v33 = vmul.f32 %v1138_v31, %v97_v24  ;;  %v1319_v34 = vmul.f32 %v113_v28, %v1316_v32  ;;  %v1324_v36 = vmul.f32 %v341_v30, %v1316_v32 }
  0xbf   :  { %v108_v37 = vsel %vm107_vm2, %v97_v24, %v106_v33  ;;  %v116_v38 = vand.u32 2147483647, %v1319_v34  ;;  %v119_v39 = vand.u32 2139095040, %v1319_v34  ;;  %v347_v44 = vand.u32 2139095040, %v1324_v36 }
  0xc0   :  { %v1328_v40 = vsel %vm109_vm3, %v110_v35, %v108_v37  ;;  %v344_v50 = vand.u32 2147483647, %v1324_v36  ;;  %vm118_vm0 = vcmp.lt.s32.totalorder %v1319_v34, 0 }
  0xc1   :  { %v1331_v41 = vmul.f32 %v113_v28, %v1328_v40  ;;  %v120_v42 = vshrl.u32 %v119_v39, 23  ;;  %v123_v43 = vand.u32 8388607, %v116_v38  ;;  %v348_v48 = vshrl.u32 %v347_v44, 23 }
  0xc2   :  { %v1345_v63 = vand.u32 8388607, %v344_v50 }
  0xc3   :  { %v1045_v45 = vadd.s32 4294967169, %v120_v42  ;;  %v220_v46 = vand.u32 2147483647, %v1331_v41  ;;  %v223_v47 = vand.u32 2139095040, %v1331_v41  ;;  %v124_v51 = vor.u32 8388608, %v123_v43 }
  0xc4   :  { %v1054_v54 = vadd.s32 4294967169, %v348_v48 }
  0xc5   :  { %v126_v49 = vadd.s32 1, %v1045_v45  ;;  %v224_v52 = vshrl.u32 %v223_v47, 23  ;;  %v227_v53 = vand.u32 8388607, %v220_v46  ;;  %v1341_v60 = vshll.u32 %v124_v51, 8 }
  0xc6   :  { %v354_v57 = vadd.s32 1, %v1054_v54  ;;  %v1372_v45 = vmul.f32 %v341_v30, %v1328_v40  ;;  %v352_v47 = vor.u32 8388608, %v1345_v63 }
  0xc7   :  { %vm127_vm4 = vcmp.gt.s32.totalorder %v126_v49, 0  ;;  %v1049_v56 = vadd.s32 4294967169, %v224_v52  ;;  %v228_v61 = vor.u32 8388608, %v227_v53 }
  0xc8   :  { %v128_v55 = vsel %vm127_vm4, %v126_v49, 0  ;;  %vm355_vm5 = vcmp.gt.s32.totalorder %v354_v57, 0 }
  0xc9   :  { %v129_v58 = vshrl.u32 %v128_v55, 5  ;;  %v130_v59 = vand.u32 31, %v128_v55  ;;  %v230_v62 = vadd.s32 1, %v1049_v56  ;;  %v1385_v55 = vshll.u32 %v228_v61, 8 }
  0xca   :  { %v356_v56 = vsel %vm355_vm5, %v354_v57, 0 }
  0xcb   :  { %v131_v0 = vsub.s32 32, %v130_v59  ;;  %v133_v2 = vshll.u32 %v1256_v1, %v130_v59  ;;  %v136_v4 = vshll.u32 %v1257_v3, %v130_v59  ;;  %v139_v6 = vshll.u32 %v1258_v5, %v130_v59 }
  0xcc   :  { %v142_v8 = vshll.u32 %v1259_v7, %v130_v59  ;;  %v145_v10 = vshll.u32 %v1260_v9, %v130_v59  ;;  %vm148_vm6 = vcmp.lt.s32.totalorder %v129_v58, 1  ;;  %vm149_vm7 = vcmp.lt.s32.totalorder %v129_v58, 2 }
  0xcd   :  { %v134_v11 = vshrl.u32 %v1257_v3, %v131_v0  ;;  %v137_v12 = vshrl.u32 %v1258_v5, %v131_v0  ;;  %v140_v13 = vshrl.u32 %v1259_v7, %v131_v0  ;;  %v132_v14 = vshrl.u32 %v1256_v1, %v131_v0 }
  0xce   :  { %v143_v15 = vshrl.u32 %v1260_v9, %v131_v0  ;;  %v146_v17 = vshrl.u32 %v1261_v16, %v131_v0  ;;  %vm150_vm8 = vcmp.lt.s32.totalorder %v129_v58, 3  ;;  %vm231_vm9 = vcmp.gt.s32.totalorder %v230_v62, 0 }
  0xcf   :  { %v135_v18 = vor.u32 %v134_v11, %v133_v2  ;;  %v138_v19 = vor.u32 %v137_v12, %v136_v4  ;;  %v141_v20 = vor.u32 %v140_v13, %v139_v6  ;;  %vm151_vm10 = vcmp.lt.s32.totalorder %v129_v58, 4 }
  0xd0   :  { %v144_v21 = vor.u32 %v143_v15, %v142_v8  ;;  %v147_v22 = vor.u32 %v146_v17, %v145_v10  ;;  %v232_v23 = vsel %vm231_vm9, %v230_v62, 0  ;;  %vm1522_vm9 = vcmp.le.f32.partialorder %v220_v46, 0.7853982 }
  0xd1   :  { %v152_v24 = vsel %vm148_vm6, %v132_v14, %v135_v18  ;;  %v153_v25 = vsel %vm151_vm10, %v141_v20, 2102212464  ;;  %v156_v26 = vsel %vm148_vm6, %v135_v18, %v138_v19  ;;  %v160_v27 = vsel %vm148_vm6, %v138_v19, %v141_v20 }
  0xd2   :  { %v154_v28 = vsel %vm150_vm8, %v138_v19, %v153_v25  ;;  %v157_v29 = vsel %vm151_vm10, %v144_v21, 920167782  ;;  %v161_v31 = vsel %vm151_vm10, %v147_v22, 1326507024  ;;  %v1362_v33 = vshrl.u32 %v232_v23, 5 }
  0xd3   :  { %v155_v35 = vsel %vm149_vm7, %v152_v24, %v154_v28  ;;  %v158_v37 = vsel %vm150_vm8, %v141_v20, %v157_v29  ;;  %v162_v39 = vsel %vm150_vm8, %v144_v21, %v161_v31  ;;  %v234_v42 = vand.u32 31, %v232_v23 }
  0xd4   :  { %v159_v43 = vsel %vm149_vm7, %v156_v26, %v158_v37  ;;  %v163_v44 = vsel %vm149_vm7, %v160_v27, %v162_v39  ;;  %v171_v53 = vmul.u32 %v1341_v60, %v155_v35  ;;  %vm252_vm11 = vcmp.lt.s32.totalorder %v1362_v33, 1 }
  0xd5   :  { %v1376_v48 = vmul.u32.u64.low %v1341_v60, %v163_v44  ;;  %v1377_v49 = vmul.u32.u64.high %v1341_v60, %v163_v44, %v1376_v48  ;;  %v1380_v51 = vmul.u32.u64.low %v1341_v60, %v159_v43  ;;  %v1381_v52 = vmul.u32.u64.high %v1341_v60, %v159_v43, %v1380_v51 }
  0xd6   :  { %v235_v54 = vsub.s32 32, %v234_v42  ;;  %v237_v30 = vshll.u32 %v1256_v1, %v234_v42  ;;  %v240_v58 = vshll.u32 %v1257_v3, %v234_v42  ;;  %v243_v59 = vshll.u32 %v1258_v5, %v234_v42 }
  0xd7   :  { %v246_v60 = vshll.u32 %v1259_v7, %v234_v42  ;;  %vm173_vm12 = vc.u32 %v1377_v49, %v1380_v51  ;;  %v174_v57 = vadd.s32 1, %v1381_v52  ;;  %v249_v2 = vshll.u32 %v1260_v9, %v234_v42 }
  0xd8   :  { %v238_v62 = vshrl.u32 %v1257_v3, %v235_v54  ;;  %v241_v63 = vshrl.u32 %v1258_v5, %v235_v54  ;;  %v244_v0 = vshrl.u32 %v1259_v7, %v235_v54  ;;  %v247_v61 = vshrl.u32 %v1260_v9, %v235_v54 }
  0xd9   :  { %v250_v10 = vshrl.u32 %v1261_v16, %v235_v54  ;;  %v175_v11 = vsel %vm173_vm12, %v174_v57, %v1381_v52  ;;  %vm253_vm13 = vcmp.lt.s32.totalorder %v1362_v33, 2  ;;  %vm255_vm14 = vcmp.lt.s32.totalorder %v1362_v33, 4 }
  0xda   :  { %v239_v4 = vor.u32 %v238_v62, %v237_v30  ;;  %v242_v6 = vor.u32 %v241_v63, %v240_v58  ;;  %v245_v8 = vor.u32 %v244_v0, %v243_v59  ;;  %v248_v12 = vor.u32 %v247_v61, %v246_v60 }
  0xdb   :  { %v176_v13 = vadd.s32 %v175_v11, %v171_v53  ;;  %v236_v14 = vshrl.u32 %v1256_v1, %v235_v54  ;;  %v251_v15 = vor.u32 %v250_v10, %v249_v2  ;;  %vm254_vm15 = vcmp.lt.s32.totalorder %v1362_v33, 3 }
  0xdc   :  { %v257_v17 = vsel %vm255_vm14, %v245_v8, 2102212464  ;;  %v260_v18 = vsel %vm252_vm11, %v239_v4, %v242_v6  ;;  %v261_v19 = vsel %vm255_vm14, %v248_v12, 920167782  ;;  %v264_v20 = vsel %vm252_vm11, %v242_v6, %v245_v8 }
  0xdd   :  { %v177_v21 = vadd.s32 536870912, %v176_v13  ;;  %v256_v22 = vsel %vm252_vm11, %v236_v14, %v239_v4  ;;  %v262_v23 = vsel %vm254_vm15, %v245_v8, %v261_v19  ;;  %v265_v24 = vsel %vm255_vm14, %v251_v15, 1326507024 }
  0xde   :  { %v258_v25 = vsel %vm254_vm15, %v242_v6, %v257_v17  ;;  %v263_v26 = vsel %vm253_vm13, %v260_v18, %v262_v23  ;;  %v266_v27 = vsel %vm254_vm15, %v248_v12, %v265_v24  ;;  %v358_v28 = vand.u32 31, %v356_v56 }
  0xdf   :  { %v178_v29 = vshrl.u32 %v177_v21, 30  ;;  %v267_v31 = vsel %vm253_vm13, %v264_v20, %v266_v27  ;;  %v1424_v35 = vmul.u32.u64.low %v1385_v55, %v263_v26  ;;  %v1425_v37 = vmul.u32.u64.high %v1385_v55, %v263_v26, %v1424_v35 }
  0xe0   :  { %v1429_v39 = vmul.u32.u64.low %v1385_v55, %v267_v31  ;;  %v1430_v42 = vmul.u32.u64.high %v1385_v55, %v267_v31, %v1429_v39  ;;  %v359_v43 = vsub.s32 32, %v358_v28  ;;  %v259_v48 = vsel %vm253_vm13, %v256_v22, %v258_v25 }
  0xe1   :  { %v179_v44 = vshll.u32 %v178_v29, 30  ;;  %v570_v52 = vstv %s1402_s11  ;;  %v328_v53 = vstv %s1409_s13  ;;  %v335_v54 = vstv %s1407_s12 }
  0xe2   :  { %v1438_v30 = vshll.u32 %v352_v47, 8  ;;  %v278_v59 = vadd.s32 1, %v1425_v37  ;;  %v1443_v62 = vshrl.u32 %v356_v56, 5  ;;  %v451_v63 = vand.u32 2139095040, %v1372_v45 }
  0xe3   :  { %v1440_v58 = vsub.s32 %v176_v13, %v179_v44  ;;  %v275_v0 = vmul.u32 %v1385_v55, %v259_v48  ;;  %vm277_vm1 = vc.u32 %v1430_v42, %v1424_v35  ;;  %v361_v33 = vshll.u32 %v1256_v1, %v358_v28 }
  0xe4   :  { %v362_v60 = vshrl.u32 %v1257_v3, %v359_v43  ;;  %v279_v57 = vsel %vm277_vm1, %v278_v59, %v1425_v37  ;;  %v365_v61 = vshrl.u32 %v1258_v5, %v359_v43  ;;  %v368_v56 = vshrl.u32 %v1259_v7, %v359_v43 }
  0xe5   :  { %v182_v47 = vsub.s32 0, %v1440_v58  ;;  %v202_v2 = vsub.s32 4, %v178_v29  ;;  %v280_v4 = vadd.s32 %v279_v57, %v275_v0  ;;  %v370_v6 = vshll.u32 %v1259_v7, %v358_v28 }
  0xe6   :  { %v371_v55 = vshrl.u32 %v1260_v9, %v359_v43  ;;  %v364_v10 = vshll.u32 %v1257_v3, %v358_v28  ;;  %v367_v11 = vshll.u32 %v1258_v5, %v358_v28  ;;  %v374_v12 = vshrl.u32 %v1261_v16, %v359_v43 }
  0xe7   :  { %v1046_v8 = vmin.u32 %v182_v47, %v1440_v58  ;;  %v281_v13 = vadd.s32 536870912, %v280_v4  ;;  %v373_v15 = vshll.u32 %v1260_v9, %v358_v28  ;;  %v452_v17 = vshrl.u32 %v451_v63, 23 }
  0xe8   :  { %v372_v14 = vor.u32 %v371_v55, %v370_v6  ;;  %v363_v19 = vor.u32 %v362_v60, %v361_v33  ;;  %v366_v20 = vor.u32 %v365_v61, %v364_v10  ;;  %v369_v21 = vor.u32 %v368_v56, %v367_v11 }
  0xe9   :  { %v184_v18 = vclz %v1046_v8  ;;  %v172_v22 = vadd.s32 %v1380_v51, %v1377_v49  ;;  %v282_v23 = vshrl.u32 %v281_v13, 30  ;;  %v375_v24 = vor.u32 %v374_v12, %v373_v15 }
  0xea   :  { %vm379_vm2 = vcmp.lt.s32.totalorder %v1443_v62, 4  ;;  %v1467_v26 = vsel %vm118_vm0, %v202_v2, %v178_v29  ;;  %v360_v27 = vshrl.u32 %v1256_v1, %v359_v43  ;;  %vm376_vm3 = vcmp.lt.s32.totalorder %v1443_v62, 1 }
  0xeb   :  { %v1047_v25 = vadd.s32 4294967294, %v184_v18  ;;  %v385_v28 = vsel %vm379_vm2, %v372_v14, 920167782  ;;  %v283_v31 = vshll.u32 %v282_v23, 30  ;;  %vm377_vm4 = vcmp.lt.s32.totalorder %v1443_v62, 2 }
  0xec   :  { %vm378_vm5 = vcmp.lt.s32.totalorder %v1443_v62, 3  ;;  %v380_v49 = vsel %vm376_vm3, %v360_v27, %v363_v19  ;;  %v384_v51 = vsel %vm376_vm3, %v363_v19, %v366_v20  ;;  %v388_v43 = vsel %vm376_vm3, %v366_v20, %v369_v21 }
  0xed   :  { %vm1048_vm6 = vcmp.lt.s32.totalorder %v1047_v25, 0  ;;  %v386_v37 = vsel %vm378_vm5, %v369_v21, %v385_v28  ;;  %v1477_v39 = vsub.s32 %v280_v4, %v283_v31  ;;  %v389_v44 = vsel %vm379_vm2, %v375_v24, 1326507024 }
  0xee   :  { %v187_v29 = vsel %vm1048_vm6, 0, %v1047_v25  ;;  %v306_v63 = vsub.s32 4, %v282_v23  ;;  %v381_v0 = vsel %vm379_vm2, %v369_v21, 2102212464  ;;  %v387_v47 = vsel %vm377_vm4, %v384_v51, %v386_v37 }
  0xef   :  { %v188_v48 = vsub.s32 32, %v187_v29  ;;  %v192_v59 = vsub.s32 4294967266, %v187_v29  ;;  %v189_v33 = vshll.u32 %v1440_v58, %v187_v29  ;;  %v286_v60 = vsub.s32 0, %v1477_v39 }
  0xf0   :  { %v390_v57 = vsel %vm378_vm5, %v372_v14, %v389_v44  ;;  %v1058_v4 = vadd.s32 4294967169, %v452_v17  ;;  %v382_v55 = vsel %vm378_vm5, %v366_v20, %v381_v0  ;;  %vm1505_vm7 = vcmp.le.f32.partialorder %v116_v38, 0.7853982 }
  0xf1   :  { %v190_v61 = vshrl.u32 %v172_v22, %v188_v48  ;;  %v193_v56 = vadd.s32 127, %v192_v59  ;;  %v391_v2 = vsel %vm377_vm4, %v388_v43, %v390_v57  ;;  %v1050_v6 = vmin.u32 %v286_v60, %v1477_v39 }
  0xf2   :  { %v1495_v58 = vmul.u32.u64.low %v1438_v30, %v391_v2  ;;  %v1496_v8 = vmul.u32.u64.high %v1438_v30, %v391_v2, %v1495_v58  ;;  %v1499_v12 = vmul.u32.u64.low %v1438_v30, %v387_v47  ;;  %v1500_v13 = vmul.u32.u64.high %v1438_v30, %v387_v47, %v1499_v12 }
  0xf3   :  { %v191_v10 = vor.u32 %v190_v61, %v189_v33  ;;  %v194_v11 = vshll.u32 %v193_v56, 23  ;;  %vm222_vm8 = vcmp.lt.s32.totalorder %v1331_v41, 0  ;;  %v288_v15 = vclz %v1050_v6 }
  0xf4   :  { %v448_v17 = vand.u32 2147483647, %v1372_v45  ;;  %v307_v19 = vsel %vm222_vm8, %v306_v63, %v282_v23  ;;  %v383_v20 = vsel %vm377_vm4, %v380_v49, %v382_v55  ;;  %v458_v21 = vadd.s32 1, %v1058_v4 }
  0xf5   :  { %v195_v18 = vor.u32 4788187, %v194_v11  ;;  %v205_v38 = vsel %vm1505_vm7, 0, %v1467_v26  ;;  %v1051_v24 = vadd.s32 4294967294, %v288_v15  ;;  %vm401_vm10 = vc.u32 %v1496_v8, %v1499_v12 }
  0xf6   :  { %v198_v62 = vcvt.s32.f32 %v191_v10  ;;  %v402_v25 = vadd.s32 1, %v1500_v13  ;;  %vm459_vm11 = vcmp.gt.s32.totalorder %v458_v21, 0  ;;  %v309_v27 = vsel %vm1522_vm9, 0, %v307_v19 }
  0xf7   :  { %v196_v23 = vand.u32 2147483647, %v195_v18  ;;  %vm1052_vm12 = vcmp.lt.s32.totalorder %v1051_v24, 0  ;;  %v399_v26 = vmul.u32 %v1438_v30, %v383_v20  ;;  %v460_v28 = vsel %vm459_vm11, %v458_v21, 0 }
  0xf8   :  { %v291_v31 = vsel %vm1052_vm12, 0, %v1051_v24  ;;  %v403_v49 = vsel %vm401_vm10, %v402_v25, %v1500_v13  ;;  %v455_v51 = vand.u32 8388607, %v448_v17  ;;  %v276_v37 = vadd.s32 %v1424_v35, %v1430_v42 }
  0xf9   :  { %v199_v46 = vmul.f32 %v198_v62, %v196_v23  ;;  %v292_v29 = vsub.s32 32, %v291_v31  ;;  %v296_v43 = vsub.s32 4294967266, %v291_v31  ;;  %v404_v44 = vadd.s32 %v403_v49, %v399_v26 }
  0xfa   :  { %v209_v59 = vadd.s32 3, %v205_v38  ;;  %v313_v63 = vadd.s32 3, %v309_v27  ;;  %v462_v30 = vand.u32 31, %v460_v28  ;;  %v293_v0 = vshll.u32 %v1477_v39, %v291_v31 }
  0xfb   :  { %v200_v48 = vxor.u32 2147483648, %v199_v46  ;;  %v294_v33 = vshrl.u32 %v276_v37, %v292_v29  ;;  %v297_v60 = vadd.s32 127, %v296_v43  ;;  %v405_v47 = vadd.s32 536870912, %v404_v44 }
  0xfc   :  { %v463_v61 = vsub.s32 32, %v462_v30  ;;  %v1543_v56 = vmul.f32 %v570_v52, %v1316_v32  ;;  %v799_v35 = vstv %s1515_s14  ;;  %v1551_v39 = vand.u32 3, %v209_v59 }
  0xfd   :  { %v201_v57 = vsel %vm118_vm0, %v200_v48, %v199_v46  ;;  %v295_v2 = vor.u32 %v294_v33, %v293_v0  ;;  %v298_v4 = vshll.u32 %v297_v60, 23  ;;  %v1549_v6 = vshrl.u32 %v405_v47, 30 }
  0xfe   :  { %v204_v42 = vsel %vm1505_vm7, %v1319_v34, %v201_v57  ;;  %v1553_v55 = vand.u32 3, %v313_v63  ;;  %v456_v58 = vor.u32 8388608, %v455_v51  ;;  %v466_v13 = vshrl.u32 %v1257_v3, %v463_v61 }
  0xff   :  { %1139 = vcosq.f32 %v204_v42  ;;  %v299_v10 = vor.u32 4788187, %v298_v4  ;;  %v407_v11 = vshll.u32 %v1549_v6, 30  ;;  %v1557_v15 = vshrl.u32 %v460_v28, 5 }
 0x100   :  { %1141 = vsinq.f32 %v204_v42  ;;  %v465_v14 = vshll.u32 %v1256_v1, %v462_v30  ;;  %v468_v18 = vshll.u32 %v1257_v3, %v462_v30  ;;  %v469_v19 = vshrl.u32 %v1258_v5, %v463_v61 }
 0x101   :  { %v300_v20 = vand.u32 2147483647, %v299_v10  ;;  %v302_v21 = vcvt.s32.f32 %v295_v2  ;;  %v1562_v38 = vsub.s32 %v404_v44, %v407_v11  ;;  %v472_v24 = vshrl.u32 %v1259_v7, %v463_v61 }
 0x102   :  { %vm215_vm13 = vcmp.eq.s32.totalorder %v1551_v39, 2  ;;  %v471_v23 = vshll.u32 %v1258_v5, %v462_v30  ;;  %v474_v62 = vshll.u32 %v1259_v7, %v462_v30  ;;  %v475_v25 = vshrl.u32 %v1260_v9, %v463_v61 }
 0x103   :  { %v478_v27 = vshrl.u32 %v1261_v16, %v463_v61  ;;  %vm212_vm14 = vcmp.eq.s32.totalorder %v1551_v39, 0  ;;  %v303_v26 = vmul.f32 %v302_v21, %v300_v20  ;;  %v400_v28 = vadd.s32 %v1499_v12, %v1496_v8 }
 0x104   :  { %v410_v46 = vsub.s32 0, %v1562_v38  ;;  %v467_v31 = vor.u32 %v466_v13, %v465_v14  ;;  %vm211_vm15 = vcmp.lt.s32.totalorder %v1551_v39, 2  ;;  %v470_v49 = vor.u32 %v469_v19, %v468_v18 }
 0x105   :  { %v473_v51 = vor.u32 %v472_v24, %v471_v23  ;;  %v476_v37 = vor.u32 %v475_v25, %v474_v62  ;;  %v477_v29 = vshll.u32 %v1260_v9, %v462_v30  ;;  %vm208_vm0 = vweird.f32 %v1319_v34 }
 0x106   :  { %v304_v43 = vxor.u32 2147483648, %v303_v26  ;;  %vm346_vm1 = vcmp.lt.s32.totalorder %v1324_v36, 0  ;;  %v1055_v44 = vmin.u32 %v410_v46, %v1562_v38  ;;  %vm483_vm2 = vcmp.lt.s32.totalorder %v1557_v15, 4 }
 0x107   :  { %v1580_v8 = vshll.u32 %v456_v58, 8  ;;  %v479_v12 = vor.u32 %v478_v27, %v477_v29  ;;  %vm480_vm3 = vcmp.lt.s32.totalorder %v1557_v15, 1  ;;  %vm481_vm4 = vcmp.lt.s32.totalorder %v1557_v15, 2 }
 0x108   :  { %v489_v48 = vsel %vm483_vm2, %v476_v37, 920167782  ;;  %v305_v59 = vsel %vm222_vm8, %v304_v43, %v303_v26  ;;  %v412_v63 = vclz %v1055_v44  ;;  %v464_v30 = vshrl.u32 %v1256_v1, %v463_v61 }
 0x109   :  { %vm482_vm5 = vcmp.lt.s32.totalorder %v1557_v15, 3  ;;  %v1140_v0 = vpop.eup %1139  ;;  %v308_v33 = vsel %vm1522_vm9, %v1331_v41, %v305_v59  ;;  %v430_v60 = vsub.s32 4, %v1549_v6  ;;  %v485_v47 = vsel %vm483_vm2, %v473_v51, 2102212464 }
 0x10a   :  { %v488_v57 = vsel %vm480_vm3, %v467_v31, %v470_v49  ;;  %v1142_v42 = vpop.eup %1141  ;;  %v216_v2 = vxor.u32 2147483648, %v1140_v0  ;;  %1143 = vcosq.f32 %v308_v33  ;;  %v1056_v4 = vadd.s32 4294967294, %v412_v63 }
 0x10b   :  { %v490_v61 = vsel %vm482_vm5, %v473_v51, %v489_v48  ;;  %v213_v58 = vxor.u32 2147483648, %v1142_v42  ;;  %1145 = vsinq.f32 %v308_v33  ;;  %v492_v22 = vsel %vm480_vm3, %v470_v49, %v473_v51 }
 0x10c   :  { %v493_v10 = vsel %vm483_vm2, %v479_v12, 1326507024  ;;  %v217_v11 = vsel %vm215_vm13, %v216_v2, %v1142_v42  ;;  %vm1057_vm6 = vcmp.lt.s32.totalorder %v1056_v4, 0  ;;  %v484_v13 = vsel %vm480_vm3, %v464_v30, %v467_v31 }
 0x10d   :  { %v494_v14 = vsel %vm482_vm5, %v476_v37, %v493_v10  ;;  %v214_v18 = vsel %vm212_vm14, %v1140_v0, %v213_v58  ;;  %v415_v19 = vsel %vm1057_vm6, 0, %v1056_v4  ;;  %v486_v20 = vsel %vm482_vm5, %v470_v49, %v485_v47 }
 0x10e   :  { %v495_v21 = vsel %vm481_vm4, %v492_v22, %v494_v14  ;;  %v218_v24 = vsel %vm211_vm15, %v214_v18, %v217_v11  ;;  %v416_v23 = vsub.s32 32, %v415_v19  ;;  %v420_v62 = vsub.s32 4294967266, %v415_v19 }
 0x10f   :  { %v491_v25 = vsel %vm481_vm4, %v488_v57, %v490_v61  ;;  %v219_v27 = vsel %vm208_vm0, nan, %v218_v24  ;;  %v431_v26 = vsel %vm346_vm1, %v430_v60, %v1549_v6  ;;  %v417_v39 = vshll.u32 %v1562_v38, %v415_v19 }
 0x110   :  { %v1626_v46 = vmul.u32.u64.low %v1580_v8, %v495_v21  ;;  %v1627_v31 = vmul.u32.u64.high %v1580_v8, %v495_v21, %v1626_v46  ;;  %v325_v49 = vmul.f32 %v219_v27, %v219_v27  ;;  %v418_v51 = vshrl.u32 %v400_v28, %v416_v23 }
 0x111   :  { %v421_v37 = vadd.s32 127, %v420_v62  ;;  %v487_v29 = vsel %vm481_vm4, %v484_v13, %v486_v20  ;;  %v1633_v43 = vmul.u32.u64.low %v1580_v8, %v491_v25  ;;  %v1634_v34 = vmul.u32.u64.high %v1580_v8, %v491_v25, %v1633_v43 }
 0x112   :  { %v576_v44 = vand.u32 2139095040, %v1543_v56  ;;  %v329_v6 = vmul.f32 %v328_v53, %v325_v49  ;;  %vm1641_vm7 = vcmp.le.f32.partialorder %v344_v50, 0.7853982  ;;  %v419_v38 = vor.u32 %v418_v51, %v417_v39 }
 0x113   :  { %v422_v28 = vshll.u32 %v421_v37, 23  ;;  %vm315_vm8 = vcmp.lt.s32.totalorder %v1553_v55, 2  ;;  %vm319_vm9 = vcmp.eq.s32.totalorder %v1553_v55, 2  ;;  %v433_v15 = vsel %vm1641_vm7, 0, %v431_v26 }
 0x114   :  { %v577_v48 = vshrl.u32 %v576_v44, 23  ;;  %v1144_v59 = vpop.eup %1143  ;;  %v331_v63 = vmul.f32 1.442695, %v329_v6  ;;  %v503_v0 = vmul.u32 %v1580_v8, %v487_v29  ;;  %vm505_vm10 = vc.u32 %v1627_v31, %v1633_v43 }
 0x115   :  { %v423_v30 = vor.u32 4788187, %v422_v28  ;;  %v1146_v50 = vpop.eup %1145  ;;  %v320_v33 = vxor.u32 2147483648, %v1144_v59  ;;  %v506_v60 = vadd.s32 1, %v1634_v34  ;;  %v573_v47 = vand.u32 2147483647, %v1543_v56 }
 0x116   :  { %v1065_v57 = vadd.s32 4294967169, %v577_v48  ;;  %v317_v42 = vxor.u32 2147483648, %v1146_v50  ;;  %1147 = vpow2.f32 %v331_v63  ;;  %v426_v4 = vcvt.s32.f32 %v419_v38 }
 0x117   :  { %v424_v2 = vand.u32 2147483647, %v423_v30  ;;  %vm316_vm11 = vcmp.eq.s32.totalorder %v1553_v55, 0  ;;  %v321_v8 = vsel %vm319_vm9, %v320_v33, %v1146_v50  ;;  %v507_v61 = vsel %vm505_vm10, %v506_v60, %v1634_v34 }
 0x118   :  { %v583_v58 = vadd.s32 1, %v1065_v57  ;;  %v318_v22 = vsel %vm316_vm11, %v1144_v59, %v317_v42  ;;  %v437_v11 = vadd.s32 3, %v433_v15  ;;  %v508_v13 = vadd.s32 %v507_v61, %v503_v0 }
 0x119   :  { %v427_v10 = vmul.f32 %v426_v4, %v424_v2  ;;  %vm312_vm12 = vweird.f32 %v1331_v41  ;;  %v322_v14 = vsel %vm315_vm8, %v318_v22, %v321_v8  ;;  %v580_v18 = vand.u32 8388607, %v573_v47 }
 0x11a   :  { %vm584_vm13 = vcmp.gt.s32.totalorder %v583_v58, 0  ;;  %v323_v19 = vsel %vm312_vm12, nan, %v322_v14  ;;  %v509_v21 = vadd.s32 536870912, %v508_v13  ;;  %vm450_vm14 = vcmp.lt.s32.totalorder %v1372_v45, 0 }
 0x11b   :  { %v428_v20 = vxor.u32 2147483648, %v427_v10  ;;  %v585_v24 = vsel %vm584_vm13, %v583_v58, 0  ;;  %v326_v23 = vmul.f32 %v323_v19, %v323_v19  ;;  %v1668_v62 = vmul.f32 %v570_v52, %v1328_v40 }
 0x11c   :  { %v587_v41 = vand.u32 31, %v585_v24  ;;  %v1672_v25 = vand.u32 3, %v437_v11  ;;  %v510_v27 = vshrl.u32 %v509_v21, 30  ;;  %v556_v26 = vstv %s1651_s15 }
 0x11d   :  { %v429_v55 = vsel %vm346_vm1, %v428_v20, %v427_v10  ;;  %v330_v46 = vmul.f32 %v328_v53, %v326_v23  ;;  %vm1682_vm15 = vcmp.le.f32.partialorder %v448_v17, 0.7853982  ;;  %v1687_v52 = vadd.s32 %v1633_v43, %v1627_v31 }
 0x11e   :  { %v432_v49 = vsel %vm1641_vm7, %v1324_v36, %v429_v55  ;;  %v588_v51 = vsub.s32 32, %v587_v41  ;;  %v511_v37 = vshll.u32 %v510_v27, 30  ;;  %v534_v29 = vsub.s32 4, %v510_v27 }
 0x11f   :  { %1149 = vcosq.f32 %v432_v49  ;;  %v581_v34 = vor.u32 8388608, %v580_v18  ;;  %v333_v53 = vmul.f32 1.442695, %v330_v46  ;;  %v680_v6 = vand.u32 2139095040, %v1668_v62 }
 0x120   :  { %1151 = vsinq.f32 %v432_v49  ;;  %v591_v44 = vshrl.u32 %v1257_v3, %v588_v51  ;;  %v1148_v12 = vpop.eup %1147  ;;  %v1691_v17 = vsub.s32 %v508_v13, %v511_v37  ;;  %v1693_v38 = vshrl.u32 %v585_v24, 5 }
 0x121   :  { %v590_v31 = vshll.u32 %v1256_v1, %v587_v41  ;;  %v594_v43 = vshrl.u32 %v1258_v5, %v588_v51  ;;  %1153 = vpow2.f32 %v333_v53  ;;  %v336_v28 = vmul.f32 %v1148_v12, %v335_v54 }
 0x122   :  { %v1701_v15 = vsel %vm450_vm14, %v534_v29, %v510_v27  ;;  %v593_v48 = vshll.u32 %v1257_v3, %v587_v41  ;;  %vm443_vm0 = vcmp.eq.s32.totalorder %v1672_v25, 2  ;;  %v514_v59 = vsub.s32 0, %v1691_v17 }
 0x123   :  { %v592_v63 = vor.u32 %v591_v44, %v590_v31  ;;  %v596_v30 = vshll.u32 %v1258_v5, %v587_v41  ;;  %v597_v0 = vshrl.u32 %v1259_v7, %v588_v51  ;;  %338 = vst [vmem:[#allocation8] sm:$0xff] %v336_v28  ;;  %vm440_vm1 = vcmp.eq.s32.totalorder %v1672_v25, 0 }
 0x124   :  { %v599_v50 = vshll.u32 %v1259_v7, %v587_v41  ;;  %v600_v33 = vshrl.u32 %v1260_v9, %v588_v51  ;;  %v602_v60 = vshll.u32 %v1260_v9, %v587_v41  ;;  %v603_v57 = vshrl.u32 %v1261_v16, %v588_v51 }
 0x125   :  { %vm439_vm2 = vcmp.lt.s32.totalorder %v1672_v25, 2  ;;  %v1059_v42 = vmin.u32 %v514_v59, %v1691_v17  ;;  %v595_v2 = vor.u32 %v594_v43, %v593_v48  ;;  %v598_v4 = vor.u32 %v597_v0, %v596_v30 }
 0x126   :  { %v677_v8 = vand.u32 2147483647, %v1668_v62  ;;  %vm436_vm3 = vweird.f32 %v1324_v36  ;;  %v589_v61 = vshrl.u32 %v1256_v1, %v588_v51  ;;  %v601_v58 = vor.u32 %v600_v33, %v599_v50 }
 0x127   :  { %v604_v22 = vor.u32 %v603_v57, %v602_v60  ;;  %v681_v10 = vshrl.u32 %v680_v6, 23  ;;  %v516_v11 = vclz %v1059_v42  ;;  %v537_v13 = vsel %vm1682_vm15, 0, %v1701_v15 }
 0x128   :  { %vm605_vm4 = vcmp.lt.s32.totalorder %v1693_v38, 1  ;;  %v1722_v14 = vshll.u32 %v581_v34, 8  ;;  %vm606_vm5 = vcmp.lt.s32.totalorder %v1693_v38, 2  ;;  %vm607_vm6 = vcmp.lt.s32.totalorder %v1693_v38, 3 }
 0x129   :  { %vm608_vm7 = vcmp.lt.s32.totalorder %v1693_v38, 4  ;;  %v609_v18 = vsel %vm605_vm4, %v589_v61, %v592_v63  ;;  %v1150_v19 = vpop.eup %1149  ;;  %v1060_v20 = vadd.s32 4294967294, %v516_v11  ;;  %v613_v24 = vsel %vm605_vm4, %v592_v63, %v595_v2 }
 0x12a   :  { %v610_v21 = vsel %vm608_vm7, %v598_v4, 2102212464  ;;  %v614_v23 = vsel %vm608_vm7, %v601_v58, 920167782  ;;  %v1152_v41 = vpop.eup %1151  ;;  %v444_v55 = vxor.u32 2147483648, %v1150_v19  ;;  %v1069_v49 = vadd.s32 4294967169, %v681_v10 }
 0x12b   :  { %v615_v27 = vsel %vm607_vm6, %v598_v4, %v614_v23  ;;  %v618_v46 = vsel %vm608_vm7, %v604_v22, 1326507024  ;;  %v441_v51 = vxor.u32 2147483648, %v1152_v41  ;;  %vm1061_vm8 = vcmp.lt.s32.totalorder %v1060_v20, 0  ;;  %v1154_v34 = vpop.eup %1153 }
 0x12c   :  { %v611_v37 = vsel %vm607_vm6, %v595_v2, %v610_v21  ;;  %v617_v29 = vsel %vm605_vm4, %v595_v2, %v598_v4  ;;  %v445_v53 = vsel %vm443_vm0, %v444_v55, %v1152_v41  ;;  %v519_v44 = vsel %vm1061_vm8, 0, %v1060_v20 }
 0x12d   :  { %v616_v6 = vsel %vm606_vm5, %v613_v24, %v615_v27  ;;  %v619_v12 = vsel %vm607_vm6, %v601_v58, %v618_v46  ;;  %v337_v31 = vmul.f32 %v1154_v34, %v335_v54  ;;  %v442_v43 = vsel %vm440_vm1, %v1150_v19, %v441_v51 }
 0x12e   :  { %v520_v28 = vsub.s32 32, %v519_v44  ;;  %v521_v15 = vshll.u32 %v1691_v17, %v519_v44  ;;  %v446_v48 = vsel %vm439_vm2, %v442_v43, %v445_v53  ;;  %v524_v59 = vsub.s32 4294967266, %v519_v44 }
 0x12f   :  { %v620_v63 = vsel %vm606_vm5, %v617_v29, %v619_v12  ;;  %v687_v30 = vadd.s32 1, %v1069_v49  ;;  %339 = vst [vmem:[#allocation8 + $0x8] sm:$0xff] %v337_v31  ;;  %v447_v54 = vsel %vm436_vm3, nan, %v446_v48  ;;  %v541_v2 = vadd.s32 3, %v537_v13 }
 0x130   :  { %v522_v0 = vshrl.u32 %v1687_v52, %v520_v28  ;;  %v1758_v50 = vmul.u32.u64.low %v1722_v14, %v620_v63  ;;  %v1759_v17 = vmul.u32.u64.high %v1722_v14, %v620_v63, %v1758_v50  ;;  %v525_v25 = vadd.s32 127, %v524_v59 }
 0x131   :  { %v553_v33 = vmul.f32 %v447_v54, %v447_v54  ;;  %v1762_v60 = vmul.u32.u64.low %v1722_v14, %v616_v6  ;;  %v1763_v57 = vmul.u32.u64.high %v1722_v14, %v616_v6, %v1762_v60  ;;  %v684_v36 = vand.u32 8388607, %v677_v8 }
 0x132   :  { %v523_v42 = vor.u32 %v522_v0, %v521_v15  ;;  %vm688_vm9 = vcmp.gt.s32.totalorder %v687_v30, 0  ;;  %v526_v4 = vshll.u32 %v525_v25, 23  ;;  %v612_v61 = vsel %vm606_vm5, %v609_v18, %v611_v37 }
 0x133   :  { %v557_v52 = vmul.f32 %v556_v26, %v553_v33  ;;  %v689_v58 = vsel %vm688_vm9, %v687_v30, 0  ;;  %v563_v22 = vstv %s1733_s16  ;;  %vm630_vm10 = vc.u32 %v1759_v17, %v1762_v60 }
 0x134   :  { %v1778_v10 = vmul.f32 %v799_v35, %v1316_v32  ;;  %v527_v11 = vor.u32 4788187, %v526_v4  ;;  %v631_v19 = vadd.s32 1, %v1763_v57  ;;  %v691_v20 = vand.u32 31, %v689_v58 }
 0x135   :  { %v559_v13 = vmul.f32 1.442695, %v557_v52  ;;  %v530_v21 = vcvt.s32.f32 %v523_v42  ;;  %v1781_v24 = vand.u32 3, %v541_v2  ;;  %v628_v38 = vmul.u32 %v1722_v14, %v612_v61 }
 0x136   :  { %v685_v18 = vor.u32 8388608, %v684_v36  ;;  %v528_v23 = vand.u32 2147483647, %v527_v11  ;;  %v632_v41 = vsel %vm630_vm10, %v631_v19, %v1763_v57  ;;  %v692_v55 = vsub.s32 32, %v691_v20 }
 0x137   :  { %1155 = vpow2.f32 %v559_v13  ;;  %v633_v27 = vadd.s32 %v632_v41, %v628_v38  ;;  %v690_v46 = vshrl.u32 %v689_v58, 5  ;;  %v694_v32 = vshll.u32 %v1256_v1, %v691_v20 }
 0x138   :  { %v697_v49 = vshll.u32 %v1257_v3, %v691_v20  ;;  %v531_v51 = vmul.f32 %v530_v21, %v528_v23  ;;  %v695_v37 = vshrl.u32 %v1257_v3, %v692_v55  ;;  %v698_v29 = vshrl.u32 %v1258_v5, %v692_v55 }
 0x139   :  { %v700_v34 = vshll.u32 %v1258_v5, %v691_v20  ;;  %v634_v14 = vadd.s32 536870912, %v633_v27  ;;  %v701_v53 = vshrl.u32 %v1259_v7, %v692_v55  ;;  %v703_v44 = vshll.u32 %v1259_v7, %v691_v20 }
 0x13a   :  { %v704_v6 = vshrl.u32 %v1260_v9, %v692_v55  ;;  %v532_v12 = vxor.u32 2147483648, %v531_v51  ;;  %v696_v31 = vor.u32 %v695_v37, %v694_v32  ;;  %v699_v43 = vor.u32 %v698_v29, %v697_v49 }
 0x13b   :  { %v706_v28 = vshll.u32 %v1260_v9, %v691_v20  ;;  %v635_v15 = vshrl.u32 %v634_v14, 30  ;;  %v702_v48 = vor.u32 %v701_v53, %v700_v34  ;;  %v707_v63 = vshrl.u32 %v1261_v16, %v692_v55 }
 0x13c   :  { %v705_v59 = vor.u32 %v704_v6, %v703_v44  ;;  %v533_v30 = vsel %vm450_vm14, %v532_v12, %v531_v51  ;;  %vm709_vm11 = vcmp.lt.s32.totalorder %v690_v46, 1  ;;  %vm710_vm12 = vcmp.lt.s32.totalorder %v690_v46, 2 }
 0x13d   :  { %v725_v54 = vshll.u32 %v685_v18, 8  ;;  %v536_v0 = vsel %vm1682_vm15, %v1372_v45, %v533_v30  ;;  %v636_v50 = vshll.u32 %v635_v15, 30  ;;  %v708_v25 = vor.u32 %v707_v63, %v706_v28 }
 0x13e   :  { %vm712_vm13 = vcmp.lt.s32.totalorder %v690_v46, 4  ;;  %1157 = vcosq.f32 %v536_v0  ;;  %v693_v33 = vshrl.u32 %v1256_v1, %v692_v55  ;;  %v717_v57 = vsel %vm709_vm11, %v696_v31, %v699_v43 }
 0x13f   :  { %v718_v42 = vsel %vm712_vm13, %v705_v59, 920167782  ;;  %1159 = vsinq.f32 %v536_v0  ;;  %v1802_v2 = vsub.s32 %v633_v27, %v636_v50  ;;  %vm711_vm14 = vcmp.lt.s32.totalorder %v690_v46, 3 }
 0x140   :  { %v714_v36 = vsel %vm712_vm13, %v702_v48, 2102212464  ;;  %v713_v52 = vsel %vm709_vm11, %v693_v33, %v696_v31  ;;  %v719_v39 = vsel %vm711_vm14, %v702_v48, %v718_v42  ;;  %v721_v61 = vsel %vm709_vm11, %v699_v43, %v702_v48 }
 0x141   :  { %v1156_v4 = vpop.eup %1155  ;;  %v722_v58 = vsel %vm712_vm13, %v708_v25, 1326507024  ;;  %v639_v13 = vsub.s32 0, %v1802_v2  ;;  %v659_v19 = vsub.s32 4, %v635_v15  ;;  %v720_v20 = vsel %vm710_vm12, %v717_v57, %v719_v39 }
 0x142   :  { %v564_v11 = vmul.f32 %v1156_v4, %v563_v22  ;;  %v715_v21 = vsel %vm711_vm14, %v699_v43, %v714_v36  ;;  %v723_v38 = vsel %vm711_vm14, %v705_v59, %v722_v58  ;;  %vm575_vm15 = vcmp.lt.s32.totalorder %v1543_v56, 0 }
 0x143   :  { %v1810_v18 = vmul.u32.u64.low %v725_v54, %v720_v20  ;;  %v1811_v23 = vmul.u32.u64.high %v725_v54, %v720_v20, %v1810_v18  ;;  %v1066_v41 = vmin.u32 %v639_v13, %v1802_v2  ;;  %v724_v55 = vsel %vm710_vm12, %v721_v61, %v723_v38 }
 0x144   :  { %567 = vst [vmem:[#allocation8 + $0x10] sm:$0xff] %v564_v11  ;;  %v1816_v27 = vmul.u32.u64.low %v725_v54, %v724_v55  ;;  %v1817_v32 = vmul.u32.u64.high %v725_v54, %v724_v55, %v1816_v27  ;;  %v805_v49 = vand.u32 2139095040, %v1778_v10  ;;  %vm540_vm0 = vweird.f32 %v1372_v45 }
 0x145   :  { %v641_v51 = vclz %v1066_v41  ;;  %v660_v37 = vsel %vm575_vm15, %v659_v19, %v635_v15  ;;  %v716_v29 = vsel %vm710_vm12, %v713_v52, %v715_v21  ;;  %v802_v34 = vand.u32 2147483647, %v1778_v10 }
 0x146   :  { %vm543_vm1 = vcmp.lt.s32.totalorder %v1781_v24, 2  ;;  %vm1828_vm2 = vcmp.le.f32.partialorder %v573_v47, 0.7853982  ;;  %v735_v53 = vadd.s32 1, %v1811_v23  ;;  %v806_v44 = vshrl.u32 %v805_v49, 23 }
 0x147   :  { %vm544_vm3 = vcmp.eq.s32.totalorder %v1781_v24, 0  ;;  %vm547_vm4 = vcmp.eq.s32.totalorder %v1781_v24, 2  ;;  %v629_v46 = vadd.s32 %v1762_v60, %v1759_v17  ;;  %v1067_v6 = vadd.s32 4294967294, %v641_v51 }
 0x148   :  { %v1158_v12 = vpop.eup %1157  ;;  %v662_v31 = vsel %vm1828_vm2, 0, %v660_v37  ;;  %v732_v43 = vmul.u32 %v725_v54, %v716_v29  ;;  %vm734_vm5 = vc.u32 %v1817_v32, %v1810_v18  ;;  %v1076_v47 = vadd.s32 4294967169, %v806_v44 }
 0x149   :  { %v1160_v28 = vpop.eup %1159  ;;  %v548_v15 = vxor.u32 2147483648, %v1158_v12  ;;  %vm1068_vm6 = vcmp.lt.s32.totalorder %v1067_v6, 0  ;;  %v736_v48 = vsel %vm734_vm5, %v735_v53, %v1811_v23  ;;  %v809_v59 = vand.u32 8388607, %v802_v34 }
 0x14a   :  { %v545_v63 = vxor.u32 2147483648, %v1160_v28  ;;  %v644_v30 = vsel %vm1068_vm6, 0, %v1067_v6  ;;  %v737_v17 = vadd.s32 %v736_v48, %v732_v43  ;;  %v812_v60 = vadd.s32 1, %v1076_v47 }
 0x14b   :  { %v549_v0 = vsel %vm547_vm4, %v548_v15, %v1160_v28  ;;  %v645_v50 = vsub.s32 32, %v644_v30  ;;  %v649_v54 = vsub.s32 4294967266, %v644_v30  ;;  %v666_v25 = vadd.s32 3, %v662_v31 }
 0x14c   :  { %v546_v33 = vsel %vm544_vm3, %v1158_v12, %v545_v63  ;;  %v646_v57 = vshll.u32 %v1802_v2, %v644_v30  ;;  %v738_v42 = vadd.s32 536870912, %v737_v17  ;;  %vm813_vm7 = vcmp.gt.s32.totalorder %v812_v60, 0 }
 0x14d   :  { %v550_v36 = vsel %vm543_vm1, %v546_v33, %v549_v0  ;;  %v647_v4 = vshrl.u32 %v629_v46, %v645_v50  ;;  %v650_v52 = vadd.s32 127, %v649_v54  ;;  %v814_v39 = vsel %vm813_vm7, %v812_v60, 0 }
 0x14e   :  { %v551_v61 = vsel %vm540_vm0, nan, %v550_v36  ;;  %v739_v58 = vshrl.u32 %v738_v42, 30  ;;  %v810_v11 = vor.u32 8388608, %v809_v59  ;;  %v816_v13 = vand.u32 31, %v814_v39 }
 0x14f   :  { %v554_v19 = vmul.f32 %v551_v61, %v551_v61  ;;  %v648_v20 = vor.u32 %v647_v4, %v646_v57  ;;  %v651_v21 = vshll.u32 %v650_v52, 23  ;;  %vm679_vm8 = vcmp.lt.s32.totalorder %v1668_v62, 0 }
 0x150   :  { %v740_v2 = vshll.u32 %v739_v58, 30  ;;  %v1856_v24 = vmul.f32 %v799_v35, %v1328_v40  ;;  %v817_v38 = vsub.s32 32, %v816_v13  ;;  %v1860_v55 = vand.u32 3, %v666_v25 }
 0x151   :  { %v558_v23 = vmul.f32 %v556_v26, %v554_v19  ;;  %v652_v41 = vor.u32 4788187, %v651_v21  ;;  %v733_v45 = vadd.s32 %v1810_v18, %v1817_v32  ;;  %v819_v49 = vshll.u32 %v1256_v1, %v816_v13 }
 0x152   :  { %v1863_v27 = vsub.s32 %v737_v17, %v740_v2  ;;  %v820_v51 = vshrl.u32 %v1257_v3, %v817_v38  ;;  %v1867_v37 = vshll.u32 %v810_v11, 8  ;;  %v655_v40 = vcvt.s32.f32 %v648_v20 }
 0x153   :  { %v561_v29 = vmul.f32 1.442695, %v558_v23  ;;  %v653_v53 = vand.u32 2147483647, %v652_v41  ;;  %v823_v35 = vshrl.u32 %v1258_v5, %v817_v38  ;;  %v763_v44 = vsub.s32 4, %v739_v58 }
 0x154   :  { %v743_v26 = vsub.s32 0, %v1863_v27  ;;  %v815_v46 = vshrl.u32 %v814_v39, 5  ;;  %v822_v6 = vshll.u32 %v1257_v3, %v816_v13  ;;  %v821_v32 = vor.u32 %v820_v51, %v819_v49 }
 0x155   :  { %1161 = vpow2.f32 %v561_v29  ;;  %v656_v18 = vmul.f32 %v655_v40, %v653_v53  ;;  %v826_v12 = vshrl.u32 %v1259_v7, %v817_v38  ;;  %v825_v47 = vshll.u32 %v1258_v5, %v816_v13 }
 0x156   :  { %v1070_v31 = vmin.u32 %v743_v26, %v1863_v27  ;;  %v824_v43 = vor.u32 %v823_v35, %v822_v6  ;;  %v829_v28 = vshrl.u32 %v1260_v9, %v817_v38  ;;  %v828_v48 = vshll.u32 %v1259_v7, %v816_v13 }
 0x157   :  { %v657_v15 = vxor.u32 2147483648, %v656_v18  ;;  %v831_v59 = vshll.u32 %v1260_v9, %v816_v13  ;;  %v832_v63 = vshrl.u32 %v1261_v16, %v817_v38  ;;  %v1881_v17 = vsel %vm679_vm8, %v763_v44, %v739_v58 }
 0x158   :  { %v745_v30 = vclz %v1070_v31  ;;  %v827_v60 = vor.u32 %v826_v12, %v825_v47  ;;  %v909_v0 = vand.u32 2139095040, %v1856_v24  ;;  %v818_v54 = vshrl.u32 %v1256_v1, %v817_v38 }
 0x159   :  { %v658_v50 = vsel %vm575_vm15, %v657_v15, %v656_v18  ;;  %v830_v25 = vor.u32 %v829_v28, %v828_v48  ;;  %v833_v33 = vor.u32 %v832_v63, %v831_v59  ;;  %vm834_vm9 = vcmp.lt.s32.totalorder %v815_v46, 1 }
 0x15a   :  { %v661_v57 = vsel %vm1828_vm2, %v1543_v56, %v658_v50  ;;  %v1071_v42 = vadd.s32 4294967294, %v745_v30  ;;  %vm836_vm10 = vcmp.lt.s32.totalorder %v815_v46, 3  ;;  %vm837_vm11 = vcmp.lt.s32.totalorder %v815_v46, 4 }
 0x15b   :  { %1163 = vcosq.f32 %v661_v57  ;;  %v838_v36 = vsel %vm834_vm9, %v818_v54, %v821_v32  ;;  %v842_v4 = vsel %vm834_vm9, %v821_v32, %v824_v43  ;;  %v839_v52 = vsel %vm837_vm11, %v827_v60, 2102212464 }
 0x15c   :  { %1165 = vsinq.f32 %v661_v57  ;;  %vm1072_vm12 = vcmp.lt.s32.totalorder %v1071_v42, 0  ;;  %v843_v39 = vsel %vm837_vm11, %v830_v25, 920167782  ;;  %vm835_vm13 = vcmp.lt.s32.totalorder %v815_v46, 2 }
 0x15d   :  { %v748_v61 = vsel %vm1072_vm12, 0, %v1071_v42  ;;  %v840_v14 = vsel %vm836_vm10, %v824_v43, %v839_v52  ;;  %v844_v58 = vsel %vm836_vm10, %v827_v60, %v843_v39  ;;  %v846_v20 = vsel %vm834_vm9, %v824_v43, %v827_v60 }
 0x15e   :  { %v749_v11 = vsub.s32 32, %v748_v61  ;;  %v750_v13 = vshll.u32 %v1863_v27, %v748_v61  ;;  %v753_v19 = vsub.s32 4294967266, %v748_v61  ;;  %v841_v2 = vsel %vm835_vm13, %v838_v36, %v840_v14 }
 0x15f   :  { %v1162_v21 = vpop.eup %1161  ;;  %v845_v38 = vsel %vm835_vm13, %v842_v4, %v844_v58  ;;  %v847_v23 = vsel %vm837_vm11, %v833_v33, 1326507024  ;;  %v910_v41 = vshrl.u32 %v909_v0, 23  ;;  %vm1916_vm14 = vcmp.le.f32.partialorder %v677_v8, 0.7853982 }
 0x160   :  { %v565_v49 = vmul.f32 %v1162_v21, %v563_v22  ;;  %v751_v51 = vshrl.u32 %v733_v45, %v749_v11  ;;  %v754_v29 = vadd.s32 127, %v753_v19  ;;  %v848_v53 = vsel %vm836_vm10, %v830_v25, %v847_v23 }
 0x161   :  { %v849_v40 = vsel %vm835_vm13, %v846_v20, %v848_v53  ;;  %v1906_v27 = vmul.u32.u64.low %v1867_v37, %v845_v38  ;;  %v1907_v35 = vmul.u32.u64.high %v1867_v37, %v845_v38, %v1906_v27  ;;  %v1080_v26 = vadd.s32 4294967169, %v910_v41 }
 0x162   :  { %568 = vst [vmem:[#allocation8 + $0x18] sm:$0xff] %v565_v49  ;;  %v752_v44 = vor.u32 %v751_v51, %v750_v13  ;;  %v755_v6 = vshll.u32 %v754_v29, 23  ;;  %v1911_v18 = vmul.u32.u64.low %v1867_v37, %v849_v40  ;;  %v1912_v32 = vmul.u32.u64.high %v1867_v37, %v849_v40, %v1911_v18 }
 0x163   :  { %v916_v45 = vadd.s32 1, %v1080_v26  ;;  %vm669_vm15 = vcmp.eq.s32.totalorder %v1860_v55, 0  ;;  %v906_v12 = vand.u32 2147483647, %v1856_v24  ;;  %v766_v43 = vsel %vm1916_vm14, 0, %v1881_v17 }
 0x164   :  { %v756_v46 = vor.u32 4788187, %v755_v6  ;;  %v857_v47 = vmul.u32 %v1867_v37, %v841_v2  ;;  %v860_v8 = vadd.s32 1, %v1907_v35  ;;  %v759_v59 = vcvt.s32.f32 %v752_v44 }
 0x165   :  { %v1164_v31 = vpop.eup %1163  ;;  %vm917_vm0 = vcmp.gt.s32.totalorder %v916_v45, 0  ;;  %vm859_vm1 = vc.u32 %v1912_v32, %v1906_v27  ;;  %vm672_vm2 = vcmp.eq.s32.totalorder %v1860_v55, 2  ;;  %v770_v37 = vadd.s32 3, %v766_v43 }
 0x166   :  { %v1166_v28 = vpop.eup %1165  ;;  %v673_v15 = vxor.u32 2147483648, %v1164_v31  ;;  %v757_v48 = vand.u32 2147483647, %v756_v46  ;;  %v861_v30 = vsel %vm859_vm1, %v860_v8, %v1907_v35  ;;  %v918_v60 = vsel %vm917_vm0, %v916_v45, 0 }
 0x167   :  { %v670_v63 = vxor.u32 2147483648, %v1166_v28  ;;  %v862_v50 = vadd.s32 %v861_v30, %v857_v47  ;;  %vm668_vm3 = vcmp.lt.s32.totalorder %v1860_v55, 2  ;;  %v913_v25 = vand.u32 8388607, %v906_v12 }
 0x168   :  { %v674_v17 = vsel %vm672_vm2, %v673_v15, %v1166_v28  ;;  %v760_v0 = vmul.f32 %v759_v59, %v757_v48  ;;  %v920_v33 = vand.u32 31, %v918_v60  ;;  %vm665_vm4 = vweird.f32 %v1543_v56 }
 0x169   :  { %v671_v54 = vsel %vm669_vm15, %v1164_v31, %v670_v63  ;;  %v863_v36 = vadd.s32 536870912, %v862_v50  ;;  %v785_v52 = vstv %s1920_s17  ;;  %v1944_v55 = vand.u32 3, %v770_v37 }
 0x16a   :  { %v675_v57 = vsel %vm668_vm3, %v671_v54, %v674_v17  ;;  %v761_v42 = vxor.u32 2147483648, %v760_v0  ;;  %v921_v39 = vsub.s32 32, %v920_v33  ;;  %v914_v11 = vor.u32 8388608, %v913_v25 }
 0x16b   :  { %v676_v4 = vsel %vm665_vm4, nan, %v675_v57  ;;  %v1946_v58 = vshrl.u32 %v863_v36, 30  ;;  %v923_v2 = vshll.u32 %v1256_v1, %v920_v33  ;;  %v926_v38 = vshll.u32 %v1257_v3, %v920_v33 }
 0x16c   :  { %v762_v61 = vsel %vm679_vm8, %v761_v42, %v760_v0  ;;  %v782_v14 = vmul.f32 %v676_v4, %v676_v4  ;;  %v924_v13 = vshrl.u32 %v1257_v3, %v921_v39  ;;  %v927_v19 = vshrl.u32 %v1258_v5, %v921_v39 }
 0x16d   :  { %v765_v56 = vsel %vm1916_vm14, %v1668_v62, %v762_v61  ;;  %v865_v21 = vshll.u32 %v1946_v58, 30  ;;  %v929_v23 = vshll.u32 %v1258_v5, %v920_v33  ;;  %v930_v41 = vshrl.u32 %v1259_v7, %v921_v39 }
 0x16e   :  { %1167 = vcosq.f32 %v765_v56  ;;  %v786_v20 = vmul.f32 %v785_v52, %v782_v14  ;;  %v919_v29 = vshrl.u32 %v918_v60, 5  ;;  %v925_v53 = vor.u32 %v924_v13, %v923_v2 }
 0x16f   :  { %1169 = vsinq.f32 %v765_v56  ;;  %v1960_v51 = vsub.s32 %v862_v50, %v865_v21  ;;  %v928_v40 = vor.u32 %v927_v19, %v926_v38  ;;  %v931_v35 = vor.u32 %v930_v41, %v929_v23 }
 0x170   :  { %v788_v49 = vmul.f32 1.442695, %v786_v20  ;;  %v932_v26 = vshll.u32 %v1259_v7, %v920_v33  ;;  %v933_v44 = vshrl.u32 %v1260_v9, %v921_v39  ;;  %v935_v3 = vshll.u32 %v1260_v9, %v920_v33 }
 0x171   :  { %v868_v6 = vsub.s32 0, %v1960_v51  ;;  %v936_v5 = vshrl.u32 %v1261_v16, %v921_v39  ;;  %vm776_vm5 = vcmp.eq.s32.totalorder %v1944_v55, 2  ;;  %v792_v18 = vstv %s1939_s18 }
 0x172   :  { %1171 = vpow2.f32 %v788_v49  ;;  %v934_v22 = vor.u32 %v933_v44, %v932_v26  ;;  %vm772_vm6 = vcmp.lt.s32.totalorder %v1944_v55, 2  ;;  %vm938_vm7 = vcmp.lt.s32.totalorder %v919_v29, 1 }
 0x173   :  { %v1077_v45 = vmin.u32 %v868_v6, %v1960_v51  ;;  %v937_v46 = vor.u32 %v936_v5, %v935_v3  ;;  %vm941_vm8 = vcmp.lt.s32.totalorder %v919_v29, 4  ;;  %v922_v7 = vshrl.u32 %v1256_v1, %v921_v39 }
 0x174   :  { %v943_v31 = vsel %vm941_vm8, %v931_v35, 2102212464  ;;  %v946_v43 = vsel %vm938_vm7, %v925_v53, %v928_v40  ;;  %v947_v47 = vsel %vm941_vm8, %v934_v22, 920167782  ;;  %vm940_vm9 = vcmp.lt.s32.totalorder %v919_v29, 3 }
 0x175   :  { %v870_v8 = vclz %v1077_v45  ;;  %v950_v9 = vsel %vm938_vm7, %v928_v40, %v931_v35  ;;  %v954_v16 = vshll.u32 %v914_v11, 8  ;;  %vm939_vm10 = vcmp.lt.s32.totalorder %v919_v29, 2 }
 0x176   :  { %v942_v28 = vsel %vm938_vm7, %v922_v7, %v925_v53  ;;  %v948_v15 = vsel %vm940_vm9, %v931_v35, %v947_v47  ;;  %v951_v48 = vsel %vm941_vm8, %v937_v46, 1326507024  ;;  %v944_v30 = vsel %vm940_vm9, %v928_v40, %v943_v31 }
 0x177   :  { %v1078_v63 = vadd.s32 4294967294, %v870_v8  ;;  %v949_v60 = vsel %vm939_vm10, %v946_v43, %v948_v15  ;;  %v952_v17 = vsel %vm940_vm9, %v934_v22, %v951_v48  ;;  %vm773_vm12 = vcmp.eq.s32.totalorder %v1944_v55, 0 }
 0x178   :  { %v1168_v59 = vpop.eup %1167  ;;  %v953_v1 = vsel %vm939_vm10, %v950_v9, %v952_v17  ;;  %v1974_v50 = vmul.u32.u64.low %v954_v16, %v949_v60  ;;  %v1975_v54 = vmul.u32.u64.high %v954_v16, %v949_v60, %v1974_v50  ;;  %v858_v36 = vadd.s32 %v1906_v27, %v1912_v32 }
 0x179   :  { %v1170_v0 = vpop.eup %1169  ;;  %v777_v37 = vxor.u32 2147483648, %v1168_v59  ;;  %vm1079_vm11 = vcmp.lt.s32.totalorder %v1078_v63, 0  ;;  %v1978_v33 = vmul.u32.u64.low %v954_v16, %v953_v1  ;;  %v1979_v57 = vmul.u32.u64.high %v954_v16, %v953_v1, %v1978_v33 }
 0x17a   :  { %v774_v25 = vxor.u32 2147483648, %v1170_v0  ;;  %v873_v4 = vsel %vm1079_vm11, 0, %v1078_v63  ;;  %v945_v11 = vsel %vm939_vm10, %v942_v28, %v944_v30  ;;  %vm769_vm13 = vweird.f32 %v1668_v62 }
 0x17b   :  { %v778_v42 = vsel %vm776_vm5, %v777_v37, %v1170_v0  ;;  %v874_v14 = vsub.s32 32, %v873_v4  ;;  %v878_v56 = vsub.s32 4294967266, %v873_v4  ;;  %v964_v20 = vadd.s32 1, %v1975_v54 }
 0x17c   :  { %v1172_v39 = vpop.eup %1171  ;;  %v775_v61 = vsel %vm773_vm12, %v1168_v59, %v774_v25  ;;  %v875_v27 = vshll.u32 %v1960_v51, %v873_v4  ;;  %v961_v23 = vmul.u32 %v954_v16, %v945_v11  ;;  %vm963_vm14 = vc.u32 %v1979_v57, %v1974_v50 }
 0x17d   :  { %v779_v13 = vsel %vm772_vm6, %v775_v61, %v778_v42  ;;  %v793_v19 = vmul.f32 %v1172_v39, %v792_v18  ;;  %v876_v32 = vshrl.u32 %v858_v36, %v874_v14  ;;  %v879_v2 = vadd.s32 127, %v878_v56 }
 0x17e   :  { %v780_v21 = vsel %vm769_vm13, nan, %v779_v13  ;;  %v965_v55 = vsel %vm963_vm14, %v964_v20, %v1975_v54  ;;  %v888_v3 = vsub.s32 4, %v1946_v58  ;;  %vm804_vm15 = vcmp.lt.s32.totalorder %v1778_v10, 0 }
 0x17f   :  { %v783_v38 = vmul.f32 %v780_v21, %v780_v21  ;;  %796 = vst [vmem:[#allocation8 + $0x20] sm:$0xff] %v793_v19  ;;  %v877_v41 = vor.u32 %v876_v32, %v875_v27  ;;  %v880_v62 = vshll.u32 %v879_v2, 23  ;;  %v966_v29 = vadd.s32 %v965_v55, %v961_v23 }
 0x180   :  { %vm803_vm0 = vcmp.le.f32.partialorder %v802_v34, 0.7853982  ;;  %v889_v46 = vsel %vm804_vm15, %v888_v3, %v1946_v58  ;;  %v962_v58 = vadd.s32 %v1974_v50, %v1979_v57  ;;  %vm894_vm5 = vweird.f32 %v1778_v10 }
 0x181   :  { %v787_v49 = vmul.f32 %v785_v52, %v783_v38  ;;  %v881_v53 = vor.u32 4788187, %v880_v62  ;;  %v967_v35 = vadd.s32 536870912, %v966_v29  ;;  %v884_v51 = vcvt.s32.f32 %v877_v41 }
 0x182   :  { %v891_v43 = vsel %vm803_vm0, 0, %v889_v46  ;;  %v1014_v4 = vstv %s2007_s19  ;;  %vm908_vm6 = vcmp.lt.s32.totalorder %v1856_v24, 0  ;;  %vm907_vm7 = vcmp.le.f32.partialorder %v906_v12, 0.7853982 }
 0x183   :  { %v790_v40 = vmul.f32 1.442695, %v787_v49  ;;  %v882_v26 = vand.u32 2147483647, %v881_v53  ;;  %v968_v44 = vshrl.u32 %v967_v35, 30  ;;  %v895_v28 = vadd.s32 3, %v891_v43 }
 0x184   :  { %v1021_v38 = vstv %s2016_s20  ;;  %vm998_vm11 = vweird.f32 %v1856_v24 }
 0x185   :  { %1173 = vpow2.f32 %v790_v40  ;;  %v885_v6 = vmul.f32 %v884_v51, %v882_v26  ;;  %v969_v5 = vshll.u32 %v968_v44, 30  ;;  %v896_v48 = vand.u32 3, %v895_v28 }
 0x186   :  { %v992_v11 = vsub.s32 4, %v968_v44 }
 0x187   :  { %v886_v22 = vxor.u32 2147483648, %v885_v6  ;;  %v970_v45 = vsub.s32 %v966_v29, %v969_v5  ;;  %vm901_vm2 = vcmp.eq.s32.totalorder %v896_v48, 2  ;;  %vm898_vm3 = vcmp.eq.s32.totalorder %v896_v48, 0 }
 0x188   :  { %vm897_vm4 = vcmp.lt.s32.totalorder %v896_v48, 2  ;;  %v993_v27 = vsel %vm908_vm6, %v992_v11, %v968_v44 }
 0x189   :  { %v887_v52 = vsel %vm804_vm15, %v886_v22, %v885_v6  ;;  %v972_v31 = vsub.s32 0, %v970_v45  ;;  %v995_v32 = vsel %vm907_vm7, 0, %v993_v27 }
 0x18a   :  { %v890_v7 = vsel %vm803_vm0, %v1778_v10, %v887_v52  ;;  %v999_v2 = vadd.s32 3, %v995_v32 }
 0x18b   :  { %1175 = vcosq.f32 %v890_v7  ;;  %v1081_v47 = vmin.u32 %v972_v31, %v970_v45 }
 0x18c   :  { %1177 = vsinq.f32 %v890_v7  ;;  %v1000_v41 = vand.u32 3, %v999_v2 }
 0x18d   :  { %v974_v9 = vclz %v1081_v47 }
 0x18e   :  { %vm1005_vm8 = vcmp.eq.s32.totalorder %v1000_v41, 2  ;;  %vm1002_vm9 = vcmp.eq.s32.totalorder %v1000_v41, 0  ;;  %vm1001_vm10 = vcmp.lt.s32.totalorder %v1000_v41, 2 }
 0x18f   :  { %v1174_v8 = vpop.eup %1173  ;;  %v1082_v15 = vadd.s32 4294967294, %v974_v9 }
 0x190   :  { %v794_v16 = vmul.f32 %v1174_v8, %v792_v18 }
 0x191   :  { %vm1083_vm1 = vcmp.lt.s32.totalorder %v1082_v15, 0 }
 0x192   :  { %797 = vst [vmem:[#allocation8 + $0x28] sm:$0xff] %v794_v16  ;;  %v977_v34 = vsel %vm1083_vm1, 0, %v1082_v15 }
 0x193   :  { %v978_v59 = vsub.s32 32, %v977_v34  ;;  %v982_v63 = vsub.s32 4294967266, %v977_v34  ;;  %v979_v0 = vshll.u32 %v970_v45, %v977_v34 }
 0x195   :  { %v1176_v30 = vpop.eup %1175  ;;  %v980_v37 = vshrl.u32 %v962_v58, %v978_v59  ;;  %v983_v18 = vadd.s32 127, %v982_v63 }
 0x196   :  { %v1178_v60 = vpop.eup %1177  ;;  %v902_v17 = vxor.u32 2147483648, %v1176_v30 }
 0x197   :  { %v899_v1 = vxor.u32 2147483648, %v1178_v60  ;;  %v981_v25 = vor.u32 %v980_v37, %v979_v0  ;;  %v984_v33 = vshll.u32 %v983_v18, 23 }
 0x198   :  { %v903_v54 = vsel %vm901_vm2, %v902_v17, %v1178_v60 }
 0x199   :  { %v900_v42 = vsel %vm898_vm3, %v1176_v30, %v899_v1  ;;  %v985_v57 = vor.u32 4788187, %v984_v33  ;;  %v988_v61 = vcvt.s32.f32 %v981_v25 }
 0x19a   :  { %v904_v50 = vsel %vm897_vm4, %v900_v42, %v903_v54 }
 0x19b   :  { %v905_v36 = vsel %vm894_vm5, nan, %v904_v50  ;;  %v986_v39 = vand.u32 2147483647, %v985_v57 }
 0x19c   :  { %v1011_v14 = vmul.f32 %v905_v36, %v905_v36 }
 0x19d   :  { %v989_v56 = vmul.f32 %v988_v61, %v986_v39 }
 0x19e   :  { %v1015_v13 = vmul.f32 %v1014_v4, %v1011_v14 }
 0x19f   :  { %v990_v19 = vxor.u32 2147483648, %v989_v56 }
 0x1a0   :  { %v1017_v20 = vmul.f32 1.442695, %v1015_v13 }
 0x1a1   :  { %v991_v21 = vsel %vm908_vm6, %v990_v19, %v989_v56 }
 0x1a2   :  { %1179 = vpow2.f32 %v1017_v20  ;;  %v994_v10 = vsel %vm907_vm7, %v1856_v24, %v991_v21 }
 0x1a3   :  { %1181 = vcosq.f32 %v994_v10 }
 0x1a4   :  { %1183 = vsinq.f32 %v994_v10 }
 0x1ac   :  { %v1180_v23 = vpop.eup %1179 }
 0x1ad   :  { %v1022_v62 = vmul.f32 %v1180_v23, %v1021_v38  ;;  %v1182_v55 = vpop.eup %1181 }
 0x1ae   :  { %v1184_v49 = vpop.eup %1183  ;;  %v1006_v29 = vxor.u32 2147483648, %v1182_v55 }
 0x1af   :  { %1025 = vst [vmem:[#allocation8 + $0x30] sm:$0xff] %v1022_v62  ;;  %v1003_v12 = vxor.u32 2147483648, %v1184_v49 }
 0x1b0   :  { %v1007_v53 = vsel %vm1005_vm8, %v1006_v29, %v1184_v49 }
 0x1b1   :  { %v1004_v40 = vsel %vm1002_vm9, %v1182_v55, %v1003_v12 }
 0x1b2   :  { %v1008_v35 = vsel %vm1001_vm10, %v1004_v40, %v1007_v53 }
 0x1b3   :  { %v1009_v26 = vsel %vm998_vm11, nan, %v1008_v35 }
 0x1b4   :  { %v1012_v51 = vmul.f32 %v1009_v26, %v1009_v26 }
 0x1b6   :  { %v1016_v44 = vmul.f32 %v1014_v4, %v1012_v51 }
 0x1b8   :  { %v1019_v6 = vmul.f32 1.442695, %v1016_v44 }
 0x1ba   :  { %1185 = vpow2.f32 %v1019_v6 }
 0x1c4   :  { %v1186_v3 = vpop.eup %1185 }
 0x1c5   :  { %v1023_v5 = vmul.f32 %v1186_v3, %v1021_v38 }
 0x1c7   :  { %1026 = vst [vmem:[#allocation8 + $0x38] sm:$0xff] %v1023_v5 }
 0x1c8   :  { %1234 = shalt.err (!%p1231_p5)
}
 0x1c9   :  { %s1235_s26 = scalar_lea.hbm %s2038_s5, 1024 }
 0x1ca   :  { %p1236_p6 = scmp.ne.s32.totalorder %s2038_s5, %s1235_s26  ;;  %p1239_p7 = scmp.lt.u32.totalorder %s1235_s26, %s2038_s5 }
 0x1cc   :  { %p1241_p8 = pnand %p1239_p7, %p1236_p6 }
 0x1ce   :  { %1244 = shalt.err (!%p1241_p8)
}
 0x1cf   :  { %s1263_s29 = smov 128   ;;  %s1264_s30 = smov 8  }
 0x1d0   :  { %1038 = dma.vmem_to_hbm [thread:$0]  %s1033_s22, 1024, %s2038_s5, [#allocation3], %s1263_s29, %s1263_s29, %s1264_s30  }
 0x1d1   :  { %1249 = dma.done.wait [#allocation3], 1024  }
 0x1d2   :  { %1250 = vsyncadd [#allocation3], 4294966272 }
 0x1d3   :  { %1042 = vsyncpa [#allocation3], 1 }
 0x1d4   :  { %1043 = vsyncpa [#allocation4], 1 }
 0x1d5   :  { %1044 = vsyncpa [#allocation6], 1 }

</bundles_post_ra>
